<compile_context>
chip_gen: v7x
topology: tpu7x:2x2x1
jax: 0.10.0
libtpu: 0.0.40
codegen_flags: <defaults>
</compile_context>

<pallas_src>
import math
import functools

import jax
import jax.numpy as jnp
from jax.experimental import pallas as pl
from jax.experimental.pallas import tpu as pltpu

# ----------------------------- small config ---------------------------------
BATCH = 2
SEQ = 8
HIDDEN = 64
NUM_HEADS = 4
NUM_KV_HEADS = 2
HEAD_DIM = HIDDEN // NUM_HEADS            # 16
KV_GROUPS = NUM_HEADS // NUM_KV_HEADS     # 2
INTERMEDIATE = 128
RMS_EPS = 1e-6
ROPE_THETA = 10000.0

Q_D = NUM_HEADS * HEAD_DIM                # 64
KV_D = NUM_KV_HEADS * HEAD_DIM            # 32
QKVR_N = Q_D + 2 * KV_D + Q_D + KV_D      # 224 : q | k | v | q_rot | k_rot
GU_N = 2 * INTERMEDIATE                   # 256 : gate | up
CS_N = 2 * Q_D                            # 128 : cos | sin (head-tiled)


def _f16_round(x):
    # Emulate torch's `.half()` round-trip: Dekker/Veltkamp split at 13 bits
    # rounds an f32 to an 11-bit significand (= fp16 significand) using only
    # f32 mul/sub (pure VPU ops).
    # TODO(synk): fp16 exponent clamping / subnormals are not reproduced.
    t = x * jnp.float32(8193.0)   # 2**13 + 1
    return t - (t - x)


# ------------------------- fused decoder-layer kernel ------------------------
def _decoder_layer_kernel(
    x_ref, ln_ref, wqkv_ref, bqkv_ref, wo_ref, wgu_ref, wd_ref, cs_ref,
    o_ref, attn_ref, *,
    batch, seq, num_heads, num_kv_heads, head_dim, inter, eps,
):
    groups = num_heads // num_kv_heads
    qd = num_heads * head_dim
    kvd = num_kv_heads * head_dim
    S = seq

    x = x_ref[...].astype(jnp.float32)                     # (B*S, D) residual #1

    # ---- input_layernorm (RMSNorm, f32 stats) ----
    var = jnp.mean(x * x, axis=-1, keepdims=True)
    xn = x * jax.lax.rsqrt(var + eps) * ln_ref[0:1, :].astype(jnp.float32)

    # ---- fused QKV (+ rotate-half-folded q/k copies): one (B*S,64)x(64,224) ----
    qkv = jnp.dot(xn, wqkv_ref[...], preferred_element_type=jnp.float32)
    qkv = qkv + bqkv_ref[...].astype(jnp.float32)
    q = qkv[:, :qd]
    k = qkv[:, qd:qd + kvd]
    v = qkv[:, qd + kvd:qd + 2 * kvd]
    q_rot = qkv[:, qd + 2 * kvd:2 * qd + 2 * kvd]           # == rotate_half(q)
    k_rot = qkv[:, 2 * qd + 2 * kvd:]                       # == rotate_half(k)

    # ---- RoPE as two full-width FMAs (no roll / concat relayouts) ----
    cos = cs_ref[:, :qd].astype(jnp.float32)                # (B*S, H*Dh), head-tiled
    sin = cs_ref[:, qd:].astype(jnp.float32)
    q = q * cos + q_rot * sin
    k = k * cos[:, :kvd] + k_rot * sin[:, :kvd]

    # ---- causal mask for a group-stacked (2 q heads) query block ----
    row = jax.lax.broadcasted_iota(jnp.int32, (groups * S, S), 0)
    col = jax.lax.broadcasted_iota(jnp.int32, (groups * S, S), 1)
    allow = (row % S) >= col                                 # positions repeat every S rows
    neg_big = jnp.float32(-1e9)
    inv_sqrt_d = jnp.float32(1.0 / math.sqrt(head_dim))

    # ---- attention: per (batch, kv-head); q heads sharing a KV head are
    #      stacked on the sublane axis -> 1 scores + 1 PV matmul per group.
    for b in range(batch):                                   # unrolled at trace time
        r0 = b * S
        for kh in range(num_kv_heads):
            c0 = kh * head_dim
            k_g = k[r0:r0 + S, c0:c0 + head_dim]             # (S, Dh)
            v_g = v[r0:r0 + S, c0:c0 + head_dim]             # (S, Dh)
            q_g = jnp.concatenate(
                [q[r0:r0 + S,
                   (kh * groups + g) * head_dim:(kh * groups + g + 1) * head_dim]
                 for g in range(groups)], axis=0)            # (groups*S, Dh)
            s = jax.lax.dot_general(q_g, k_g, (((1,), (1,)), ((), ())),
                                    preferred_element_type=jnp.float32)
            s = jnp.where(allow, s * inv_sqrt_d, neg_big)
            m = jnp.max(s, axis=-1, keepdims=True)
            pw = jnp.exp(s - m)
            pw = pw / jnp.sum(pw, axis=-1, keepdims=True)    # exact divide (torch parity)
            o_g = jnp.dot(pw, v_g, preferred_element_type=jnp.float32)  # (groups*S, Dh)
            for g in range(groups):                          # static-slice scratch writes
                h = kh * groups + g
                attn_ref[r0:r0 + S, h * head_dim:(h + 1) * head_dim] = \
                    o_g[g * S:(g + 1) * S, :]

    # ---- o_proj + residual (fused) ----
    h1 = x + jnp.dot(attn_ref[...], wo_ref[...], preferred_element_type=jnp.float32)

    # ---- post_attention_layernorm + torch .half() emulation ----
    var2 = jnp.mean(h1 * h1, axis=-1, keepdims=True)
    x2 = h1 * jax.lax.rsqrt(var2 + eps) * ln_ref[1:2, :].astype(jnp.float32)
    x2 = _f16_round(x2)

    # ---- MLP: down( SiLU(gate(x)) * up(x) ) + residual (fused) ----
    gu = jnp.dot(x2, wgu_ref[...], preferred_element_type=jnp.float32)   # (B*S, 2I)
    g_ = gu[:, :inter]
    u_ = gu[:, inter:]
    act = (g_ * jax.nn.sigmoid(g_)) * u_
    out = h1 + jnp.dot(act, wd_ref[...], preferred_element_type=jnp.float32)
    o_ref[...] = out.astype(o_ref.dtype)


def _cost_estimate(B, S, D, H, KVH, Dh, I):
    N = B * S
    qkvr_n = (2 * H + 3 * KVH) * Dh
    mm = 2 * N * (D * qkvr_n + D * D + D * 2 * I + I * D)
    attn = 2 * 2 * B * H * S * S * Dh                         # QK^T and PV
    transc = B * H * S * S + N * I + 2 * N                    # exp, logistic, rsqrt
    w_bytes = 4 * (D * qkvr_n + qkvr_n + D * D + D * 2 * I + I * D + 2 * D)
    io_bytes = 4 * (2 * N * D + N * 2 * H * Dh)
    return pl.CostEstimate(flops=mm + attn, transcendentals=transc,
                           bytes_accessed=w_bytes + io_bytes)


@jax.jit
def decoder_layer_forward(kparams, hidden_states, cos, sin):
    B, S, D = hidden_states.shape
    N = B * S
    x2d = hidden_states.reshape(N, D)

    # cos|sin packed: tiled across heads along lanes and across batch along rows,
    # so RoPE for all heads / both batch elements is one FMA in the kernel.
    cs = jnp.concatenate([jnp.tile(cos, (1, NUM_HEADS)),
                          jnp.tile(sin, (1, NUM_HEADS))], axis=-1)     # (S, 128)
    cs = jnp.tile(cs, (B, 1))                                          # (B*S, 128)

    kernel = functools.partial(
        _decoder_layer_kernel,
        batch=B, seq=S, num_heads=NUM_HEADS, num_kv_heads=NUM_KV_HEADS,
        head_dim=HEAD_DIM, inter=INTERMEDIATE, eps=RMS_EPS)

    out = pl.pallas_call(
        kernel,
        out_shape=jax.ShapeDtypeStruct((N, D), hidden_states.dtype),
        grid=(1,),                                   # whole layer = one grid step
        in_specs=[
            pl.BlockSpec((N, D), lambda i: (0, 0)),              # hidden (B*S, D)
            pl.BlockSpec((2, D), lambda i: (0, 0)),              # ln1|ln2
            pl.BlockSpec((D, QKVR_N), lambda i: (0, 0)),         # q|k|v|q_rot|k_rot
            pl.BlockSpec((1, QKVR_N), lambda i: (0, 0)),         # fused bias
            pl.BlockSpec((D, D), lambda i: (0, 0)),              # wo
            pl.BlockSpec((D, GU_N), lambda i: (0, 0)),           # gate|up
            pl.BlockSpec((INTERMEDIATE, D), lambda i: (0, 0)),   # down
            pl.BlockSpec((N, CS_N), lambda i: (0, 0)),           # cos|sin
        ],
        out_specs=pl.BlockSpec((N, D), lambda i: (0, 0)),
        scratch_shapes=[pltpu.VMEM((N, D), jnp.float32)],        # attn-output slab
        compiler_params=pltpu.CompilerParams(
            dimension_semantics=("arbitrary",)),
        cost_estimate=_cost_estimate(B, S, D, NUM_HEADS, NUM_KV_HEADS,
                                     HEAD_DIM, INTERMEDIATE),
    )(x2d, kparams["ln"], kparams["wqkvr"], kparams["bqkvr"],
      kparams["wo"], kparams["wgu"], kparams["wd"], cs)
    return out.reshape(B, S, D)


# ------------------------------- JAX glue ------------------------------------
def rotary_tables(seq_len, dim, theta):
    inv_freq = 1.0 / (theta ** (jnp.arange(0, dim, 2, dtype=jnp.float32) / dim))
    pos = jnp.arange(seq_len, dtype=jnp.float32)
    freqs = jnp.outer(pos, inv_freq)                      # (S, dim/2)
    emb = jnp.concatenate([freqs, freqs], axis=-1)        # (S, dim)
    return jnp.cos(emb), jnp.sin(emb)


def init_params(key):
    ks = jax.random.split(key, 12)

    def w(k, shape):
        return jax.random.normal(k, shape, jnp.float32) * 0.02

    # Qwen2 layout: q/k/v have bias, o_proj / MLP do not; stored as [in, out].
    return dict(
        ln1_w=1.0 + 0.01 * jax.random.normal(ks[10], (HIDDEN,), jnp.float32),
        ln2_w=1.0 + 0.01 * jax.random.normal(ks[11], (HIDDEN,), jnp.float32),
        wq=w(ks[0], (HIDDEN, Q_D)), bq=w(ks[1], (Q_D,)),
        wk=w(ks[2], (HIDDEN, KV_D)), bk=w(ks[3], (KV_D,)),
        wv=w(ks[4], (HIDDEN, KV_D)), bv=w(ks[5], (KV_D,)),
        wo=w(ks[6], (Q_D, HIDDEN)),
        wg=w(ks[7], (HIDDEN, INTERMEDIATE)),
        wu=w(ks[8], (HIDDEN, INTERMEDIATE)),
        wd=w(ks[9], (INTERMEDIATE, HIDDEN)),
    )


def _fold_rotate_half(w, b, n_heads, head_dim):
    # rotate_half is a signed per-head lane permutation -> fold it into weight
    # columns so rotate_half(x @ w + b) falls out of the same fused matmul.
    half = head_dim // 2
    w3 = w.reshape(w.shape[0], n_heads, head_dim)
    b2 = b.reshape(n_heads, head_dim)
    w_rot = jnp.concatenate([-w3[..., half:], w3[..., :half]], axis=-1)
    b_rot = jnp.concatenate([-b2[..., half:], b2[..., :half]], axis=-1)
    return w_rot.reshape(w.shape), b_rot.reshape(b.shape)


def pack_params(p):
    wq_r, bq_r = _fold_rotate_half(p["wq"], p["bq"], NUM_HEADS, HEAD_DIM)
    wk_r, bk_r = _fold_rotate_half(p["wk"], p["bk"], NUM_KV_HEADS, HEAD_DIM)
    return dict(
        ln=jnp.stack([p["ln1_w"], p["ln2_w"]], axis=0),                      # (2, D)
        wqkvr=jnp.concatenate([p["wq"], p["wk"], p["wv"], wq_r, wk_r], 1),   # (D, 224)
        bqkvr=jnp.concatenate([p["bq"], p["bk"], p["bv"], bq_r, bk_r],
                              0).reshape(1, QKVR_N),                         # (1, 224)
        wo=p["wo"],
        wgu=jnp.concatenate([p["wg"], p["wu"]], 1),                          # (D, 256)
        wd=p["wd"],
    )


def reference_forward(p, hidden_states, cos, sin):
    # Pure-JAX mirror of QuantQwen2DecoderLayer.forward with quantization off.
    B, S, D = hidden_states.shape
    H, KV, Dh = NUM_HEADS, NUM_KV_HEADS, HEAD_DIM
    half = Dh // 2
    hi = jax.lax.Precision.HIGHEST

    def rms(x, wgt):
        v = jnp.mean(x * x, axis=-1, keepdims=True)
        return x * jax.lax.rsqrt(v + RMS_EPS) * wgt

    def rot_half(t):
        return jnp.concatenate([-t[..., half:], t[..., :half]], axis=-1)

    resid = hidden_states
    xn = rms(hidden_states, p["ln1_w"])
    q = (jnp.dot(xn, p["wq"], precision=hi) + p["bq"]).reshape(B, S, H, Dh).transpose(0, 2, 1, 3)
    k = (jnp.dot(xn, p["wk"], precision=hi) + p["bk"]).reshape(B, S, KV, Dh).transpose(0, 2, 1, 3)
    v = (jnp.dot(xn, p["wv"], precision=hi) + p["bv"]).reshape(B, S, KV, Dh).transpose(0, 2, 1, 3)
    q = q * cos[None, None] + rot_half(q) * sin[None, None]
    k = k * cos[None, None] + rot_half(k) * sin[None, None]
    k = jnp.repeat(k, H // KV, axis=1)
    v = jnp.repeat(v, H // KV, axis=1)
    s = jnp.einsum("bhqd,bhkd->bhqk", q, k, precision=hi) / math.sqrt(Dh)
    causal = jnp.tril(jnp.ones((S, S), bool))
    s = jnp.where(causal[None, None], s, -1e9)
    pr = jax.nn.softmax(s, axis=-1)
    o = jnp.einsum("bhqk,bhkd->bhqd", pr, v, precision=hi)
    o = o.transpose(0, 2, 1, 3).reshape(B, S, D)
    h1 = resid + jnp.dot(o, p["wo"], precision=hi)
    x2 = _f16_round(rms(h1, p["ln2_w"]))
    g = jnp.dot(x2, p["wg"], precision=hi)
    u = jnp.dot(x2, p["wu"], precision=hi)
    return h1 + jnp.dot(g * jax.nn.sigmoid(g) * u, p["wd"], precision=hi)


# TODO(synk): QuantLinear / QuantMatMul fake-quant, DuQuant rotations, k/v/q
# cache quantizers and attention dropout are numerical no-ops at the default
# quant/eval state, so they are intentionally omitted.

if __name__ == "__main__":
    key = jax.random.PRNGKey(0)
    pkey, xkey = jax.random.split(key)

    raw_params = init_params(pkey)
    kparams = pack_params(raw_params)
    hidden_states = jax.random.normal(xkey, (BATCH, SEQ, HIDDEN), jnp.float32)
    cos, sin = rotary_tables(SEQ, HEAD_DIM, ROPE_THETA)

    out = decoder_layer_forward(kparams, hidden_states, cos, sin)
    jax.block_until_ready(out)

    assert out.shape == (BATCH, SEQ, HIDDEN)
    assert bool(jnp.all(jnp.isfinite(out)))

    ref = reference_forward(raw_params, hidden_states, cos, sin)
    max_err = float(jnp.max(jnp.abs(out - ref)))
    assert bool(jnp.allclose(out, ref, atol=2e-2, rtol=2e-2)), max_err
    print("KERNEL_OK")
</pallas_src>

<mosaic_0001>
module attributes {stable_mosaic.version = 11 : i64} {
  func.func @_decoder_layer_kernel(%arg0: i32, %arg1: memref<16x64xf32, #tpu.memory_space<vmem>>, %arg2: memref<2x64xf32, #tpu.memory_space<vmem>>, %arg3: memref<64x224xf32, #tpu.memory_space<vmem>>, %arg4: memref<1x224xf32, #tpu.memory_space<vmem>>, %arg5: memref<64x64xf32, #tpu.memory_space<vmem>>, %arg6: memref<64x256xf32, #tpu.memory_space<vmem>>, %arg7: memref<128x64xf32, #tpu.memory_space<vmem>>, %arg8: memref<16x128xf32, #tpu.memory_space<vmem>>, %arg9: memref<16x64xf32, #tpu.memory_space<vmem>>, %arg10: memref<16x64xf32, #tpu.memory_space<vmem>>) attributes {dimension_semantics = [#tpu.dimension_semantics<arbitrary>], iteration_bounds = array<i64: 1>, scalar_prefetch = 0 : i64, scratch_operands = 1 : i64, tpu.core_type = #tpu.core_type<tc>, window_params = [{pipeline_mode = #tpu.pipeline_mode<synchronous>, transform_indices = @transform_0, window_bounds = array<i64: 16, 64>}, {pipeline_mode = #tpu.pipeline_mode<synchronous>, transform_indices = @transform_1, window_bounds = array<i64: 2, 64>}, {pipeline_mode = #tpu.pipeline_mode<synchronous>, transform_indices = @transform_2, window_bounds = array<i64: 64, 224>}, {pipeline_mode = #tpu.pipeline_mode<synchronous>, transform_indices = @transform_3, window_bounds = array<i64: 1, 224>}, {pipeline_mode = #tpu.pipeline_mode<synchronous>, transform_indices = @transform_4, window_bounds = array<i64: 64, 64>}, {pipeline_mode = #tpu.pipeline_mode<synchronous>, transform_indices = @transform_5, window_bounds = array<i64: 64, 256>}, {pipeline_mode = #tpu.pipeline_mode<synchronous>, transform_indices = @transform_6, window_bounds = array<i64: 128, 64>}, {pipeline_mode = #tpu.pipeline_mode<synchronous>, transform_indices = @transform_7, window_bounds = array<i64: 16, 128>}, {pipeline_mode = #tpu.pipeline_mode<synchronous>, transform_indices = @transform_8, window_bounds = array<i64: 16, 64>}]} {
    %c0 = arith.constant 0 : index
    %c0_0 = arith.constant 0 : index
    %0 = vector.load %arg1[%c0, %c0_0] : memref<16x64xf32, #tpu.memory_space<vmem>>, vector<16x64xf32>
    %1 = arith.mulf %0, %0 : vector<16x64xf32>
    %cst = arith.constant dense<0.000000e+00> : vector<16xf32>
    %2 = vector.multi_reduction <add>, %1, %cst [1] : vector<16x64xf32> to vector<16xf32>
    %3 = vector.shape_cast %2 : vector<16xf32> to vector<16x1xf32>
    %cst_1 = arith.constant 6.400000e+01 : f32
    %4 = vector.broadcast %cst_1 : f32 to vector<16x1xf32>
    %5 = arith.divf %3, %4 : vector<16x1xf32>
    %cst_2 = arith.constant 9.99999997E-7 : f32
    %6 = vector.broadcast %cst_2 : f32 to vector<16x1xf32>
    %7 = arith.addf %5, %6 : vector<16x1xf32>
    %8 = math.rsqrt %7 : vector<16x1xf32>
    %9 = vector.broadcast %8 : vector<16x1xf32> to vector<16x64xf32>
    %10 = arith.mulf %0, %9 : vector<16x64xf32>
    %c0_3 = arith.constant 0 : index
    %c0_4 = arith.constant 0 : index
    %11 = vector.load %arg2[%c0_3, %c0_4] : memref<2x64xf32, #tpu.memory_space<vmem>>, vector<1x64xf32>
    %12 = vector.broadcast %11 : vector<1x64xf32> to vector<16x64xf32>
    %13 = arith.mulf %10, %12 : vector<16x64xf32>
    %c0_5 = arith.constant 0 : index
    %c0_6 = arith.constant 0 : index
    %14 = vector.load %arg3[%c0_5, %c0_6] : memref<64x224xf32, #tpu.memory_space<vmem>>, vector<64x224xf32>
    %cst_7 = arith.constant dense<0.000000e+00> : vector<16x224xf32>
    %15 = tpu.matmul %13, %14, %cst_7 {dimension_numbers = #tpu.dot_dimension_numbers<[1], [0], [0], [1], [0, 0, 1, 1], [], []>} : vector<16x64xf32>, vector<64x224xf32>, vector<16x224xf32> -> vector<16x224xf32>
    %c0_8 = arith.constant 0 : index
    %c0_9 = arith.constant 0 : index
    %16 = vector.load %arg4[%c0_8, %c0_9] : memref<1x224xf32, #tpu.memory_space<vmem>>, vector<1x224xf32>
    %17 = vector.broadcast %16 : vector<1x224xf32> to vector<16x224xf32>
    %18 = arith.addf %15, %17 : vector<16x224xf32>
    %19 = vector.extract_strided_slice %18 {offsets = [0, 0], sizes = [16, 64], strides = [1, 1]} : vector<16x224xf32> to vector<16x64xf32>
    %20 = vector.extract_strided_slice %18 {offsets = [0, 64], sizes = [16, 32], strides = [1, 1]} : vector<16x224xf32> to vector<16x32xf32>
    %21 = vector.extract_strided_slice %18 {offsets = [0, 96], sizes = [16, 32], strides = [1, 1]} : vector<16x224xf32> to vector<16x32xf32>
    %22 = vector.extract_strided_slice %18 {offsets = [0, 128], sizes = [16, 64], strides = [1, 1]} : vector<16x224xf32> to vector<16x64xf32>
    %23 = vector.extract_strided_slice %18 {offsets = [0, 192], sizes = [16, 32], strides = [1, 1]} : vector<16x224xf32> to vector<16x32xf32>
    %c0_10 = arith.constant 0 : index
    %c0_11 = arith.constant 0 : index
    %24 = vector.load %arg8[%c0_10, %c0_11] : memref<16x128xf32, #tpu.memory_space<vmem>>, vector<16x64xf32>
    %c0_12 = arith.constant 0 : index
    %c64 = arith.constant 64 : index
    %25 = vector.load %arg8[%c0_12, %c64] : memref<16x128xf32, #tpu.memory_space<vmem>>, vector<16x64xf32>
    %26 = arith.mulf %19, %24 : vector<16x64xf32>
    %27 = arith.mulf %22, %25 : vector<16x64xf32>
    %28 = arith.addf %26, %27 : vector<16x64xf32>
    %29 = vector.extract_strided_slice %24 {offsets = [0, 0], sizes = [16, 32], strides = [1, 1]} : vector<16x64xf32> to vector<16x32xf32>
    %30 = arith.mulf %20, %29 : vector<16x32xf32>
    %31 = vector.extract_strided_slice %25 {offsets = [0, 0], sizes = [16, 32], strides = [1, 1]} : vector<16x64xf32> to vector<16x32xf32>
    %32 = arith.mulf %23, %31 : vector<16x32xf32>
    %33 = arith.addf %30, %32 : vector<16x32xf32>
    %34 = tpu.iota {dimensions = array<i32: 0>} : vector<16x8xi32>
    %35 = tpu.iota {dimensions = array<i32: 1>} : vector<16x8xi32>
    %c8_i32 = arith.constant 8 : i32
    %c0_i32 = arith.constant 0 : i32
    %36 = arith.cmpi eq, %c8_i32, %c0_i32 : i32
    %c1_i32 = arith.constant 1 : i32
    %37 = arith.select %36, %c1_i32, %c8_i32 : i32
    %38 = vector.broadcast %37 : i32 to vector<16x8xi32>
    %39 = arith.remsi %34, %38 : vector<16x8xi32>
    %c0_i32_13 = arith.constant 0 : i32
    %40 = vector.broadcast %c0_i32_13 : i32 to vector<16x8xi32>
    %41 = arith.cmpi ne, %39, %40 : vector<16x8xi32>
    %c0_i32_14 = arith.constant 0 : i32
    %42 = vector.broadcast %c0_i32_14 : i32 to vector<16x8xi32>
    %43 = arith.cmpi slt, %39, %42 : vector<16x8xi32>
    %c0_i32_15 = arith.constant 0 : i32
    %44 = arith.cmpi slt, %37, %c0_i32_15 : i32
    %45 = vector.broadcast %44 : i1 to vector<16x8xi1>
    %46 = vector.broadcast %45 : vector<16x8xi1> to vector<16x8xi1>
    %47 = arith.xori %43, %46 : vector<16x8xi1>
    %48 = arith.andi %47, %41 : vector<16x8xi1>
    %49 = vector.broadcast %37 : i32 to vector<16x8xi32>
    %50 = arith.addi %39, %49 : vector<16x8xi32>
    %51 = arith.select %48, %50, %39 : vector<16x8xi1>, vector<16x8xi32>
    %52 = arith.cmpi sge, %51, %35 : vector<16x8xi32>
    %53 = vector.extract_strided_slice %33 {offsets = [0, 0], sizes = [8, 16], strides = [1, 1]} : vector<16x32xf32> to vector<8x16xf32>
    %54 = vector.extract_strided_slice %21 {offsets = [0, 0], sizes = [8, 16], strides = [1, 1]} : vector<16x32xf32> to vector<8x16xf32>
    %55 = vector.extract_strided_slice %28 {offsets = [0, 0], sizes = [8, 16], strides = [1, 1]} : vector<16x64xf32> to vector<8x16xf32>
    %56 = vector.extract_strided_slice %28 {offsets = [0, 16], sizes = [8, 16], strides = [1, 1]} : vector<16x64xf32> to vector<8x16xf32>
    %57 = tpu.concatenate %55, %56 in 0 : vector<8x16xf32>, vector<8x16xf32> -> vector<16x16xf32>
    %cst_16 = arith.constant dense<0.000000e+00> : vector<16x8xf32>
    %58 = tpu.matmul %57, %53, %cst_16 {dimension_numbers = #tpu.dot_dimension_numbers<[1], [1], [0], [0], [0, 0, 1, 0], [], []>} : vector<16x16xf32>, vector<8x16xf32>, vector<16x8xf32> -> vector<16x8xf32>
    %cst_17 = arith.constant 2.500000e-01 : f32
    %59 = vector.broadcast %cst_17 : f32 to vector<16x8xf32>
    %60 = arith.mulf %58, %59 : vector<16x8xf32>
    %cst_18 = arith.constant -1.000000e+09 : f32
    %61 = vector.broadcast %cst_18 : f32 to vector<16x8xf32>
    %62 = arith.select %52, %60, %61 : vector<16x8xi1>, vector<16x8xf32>
    %cst_19 = arith.constant dense<0xFF800000> : vector<16xf32>
    %63 = vector.multi_reduction <maximumf>, %62, %cst_19 [1] : vector<16x8xf32> to vector<16xf32>
    %64 = vector.shape_cast %63 : vector<16xf32> to vector<16x1xf32>
    %65 = vector.broadcast %64 : vector<16x1xf32> to vector<16x8xf32>
    %66 = arith.subf %62, %65 : vector<16x8xf32>
    %67 = math.exp %66 : vector<16x8xf32>
    %cst_20 = arith.constant dense<0.000000e+00> : vector<16xf32>
    %68 = vector.multi_reduction <add>, %67, %cst_20 [1] : vector<16x8xf32> to vector<16xf32>
    %69 = vector.shape_cast %68 : vector<16xf32> to vector<16x1xf32>
    %70 = vector.broadcast %69 : vector<16x1xf32> to vector<16x8xf32>
    %71 = arith.divf %67, %70 : vector<16x8xf32>
    %cst_21 = arith.constant dense<0.000000e+00> : vector<16x16xf32>
    %72 = tpu.matmul %71, %54, %cst_21 {dimension_numbers = #tpu.dot_dimension_numbers<[1], [0], [0], [1], [0, 0, 1, 1], [], []>} : vector<16x8xf32>, vector<8x16xf32>, vector<16x16xf32> -> vector<16x16xf32>
    %73 = vector.extract_strided_slice %72 {offsets = [0, 0], sizes = [8, 16], strides = [1, 1]} : vector<16x16xf32> to vector<8x16xf32>
    %c0_22 = arith.constant 0 : index
    %c0_23 = arith.constant 0 : index
    %74 = vector.load %arg10[%c0_22, %c0_23] : memref<16x64xf32, #tpu.memory_space<vmem>>, vector<8x16xf32>
    tpu.vector_store %arg10[%c0_22, %c0_23], %73 {strides = array<i32>} : memref<16x64xf32, #tpu.memory_space<vmem>>, vector<8x16xf32>,
    %75 = vector.extract_strided_slice %72 {offsets = [8, 0], sizes = [8, 16], strides = [1, 1]} : vector<16x16xf32> to vector<8x16xf32>
    %c0_24 = arith.constant 0 : index
    %c16 = arith.constant 16 : index
    %76 = vector.load %arg10[%c0_24, %c16] : memref<16x64xf32, #tpu.memory_space<vmem>>, vector<8x16xf32>
    tpu.vector_store %arg10[%c0_24, %c16], %75 {strides = array<i32>} : memref<16x64xf32, #tpu.memory_space<vmem>>, vector<8x16xf32>,
    %77 = vector.extract_strided_slice %33 {offsets = [0, 16], sizes = [8, 16], strides = [1, 1]} : vector<16x32xf32> to vector<8x16xf32>
    %78 = vector.extract_strided_slice %21 {offsets = [0, 16], sizes = [8, 16], strides = [1, 1]} : vector<16x32xf32> to vector<8x16xf32>
    %79 = vector.extract_strided_slice %28 {offsets = [0, 32], sizes = [8, 16], strides = [1, 1]} : vector<16x64xf32> to vector<8x16xf32>
    %80 = vector.extract_strided_slice %28 {offsets = [0, 48], sizes = [8, 16], strides = [1, 1]} : vector<16x64xf32> to vector<8x16xf32>
    %81 = tpu.concatenate %79, %80 in 0 : vector<8x16xf32>, vector<8x16xf32> -> vector<16x16xf32>
    %cst_25 = arith.constant dense<0.000000e+00> : vector<16x8xf32>
    %82 = tpu.matmul %81, %77, %cst_25 {dimension_numbers = #tpu.dot_dimension_numbers<[1], [1], [0], [0], [0, 0, 1, 0], [], []>} : vector<16x16xf32>, vector<8x16xf32>, vector<16x8xf32> -> vector<16x8xf32>
    %cst_26 = arith.constant 2.500000e-01 : f32
    %83 = vector.broadcast %cst_26 : f32 to vector<16x8xf32>
    %84 = arith.mulf %82, %83 : vector<16x8xf32>
    %cst_27 = arith.constant -1.000000e+09 : f32
    %85 = vector.broadcast %cst_27 : f32 to vector<16x8xf32>
    %86 = arith.select %52, %84, %85 : vector<16x8xi1>, vector<16x8xf32>
    %cst_28 = arith.constant dense<0xFF800000> : vector<16xf32>
    %87 = vector.multi_reduction <maximumf>, %86, %cst_28 [1] : vector<16x8xf32> to vector<16xf32>
    %88 = vector.shape_cast %87 : vector<16xf32> to vector<16x1xf32>
    %89 = vector.broadcast %88 : vector<16x1xf32> to vector<16x8xf32>
    %90 = arith.subf %86, %89 : vector<16x8xf32>
    %91 = math.exp %90 : vector<16x8xf32>
    %cst_29 = arith.constant dense<0.000000e+00> : vector<16xf32>
    %92 = vector.multi_reduction <add>, %91, %cst_29 [1] : vector<16x8xf32> to vector<16xf32>
    %93 = vector.shape_cast %92 : vector<16xf32> to vector<16x1xf32>
    %94 = vector.broadcast %93 : vector<16x1xf32> to vector<16x8xf32>
    %95 = arith.divf %91, %94 : vector<16x8xf32>
    %cst_30 = arith.constant dense<0.000000e+00> : vector<16x16xf32>
    %96 = tpu.matmul %95, %78, %cst_30 {dimension_numbers = #tpu.dot_dimension_numbers<[1], [0], [0], [1], [0, 0, 1, 1], [], []>} : vector<16x8xf32>, vector<8x16xf32>, vector<16x16xf32> -> vector<16x16xf32>
    %97 = vector.extract_strided_slice %96 {offsets = [0, 0], sizes = [8, 16], strides = [1, 1]} : vector<16x16xf32> to vector<8x16xf32>
    %c0_31 = arith.constant 0 : index
    %c32 = arith.constant 32 : index
    %98 = vector.load %arg10[%c0_31, %c32] : memref<16x64xf32, #tpu.memory_space<vmem>>, vector<8x16xf32>
    tpu.vector_store %arg10[%c0_31, %c32], %97 {strides = array<i32>} : memref<16x64xf32, #tpu.memory_space<vmem>>, vector<8x16xf32>,
    %99 = vector.extract_strided_slice %96 {offsets = [8, 0], sizes = [8, 16], strides = [1, 1]} : vector<16x16xf32> to vector<8x16xf32>
    %c0_32 = arith.constant 0 : index
    %c48 = arith.constant 48 : index
    %100 = vector.load %arg10[%c0_32, %c48] : memref<16x64xf32, #tpu.memory_space<vmem>>, vector<8x16xf32>
    tpu.vector_store %arg10[%c0_32, %c48], %99 {strides = array<i32>} : memref<16x64xf32, #tpu.memory_space<vmem>>, vector<8x16xf32>,
    %101 = vector.extract_strided_slice %33 {offsets = [8, 0], sizes = [8, 16], strides = [1, 1]} : vector<16x32xf32> to vector<8x16xf32>
    %102 = vector.extract_strided_slice %21 {offsets = [8, 0], sizes = [8, 16], strides = [1, 1]} : vector<16x32xf32> to vector<8x16xf32>
    %103 = vector.extract_strided_slice %28 {offsets = [8, 0], sizes = [8, 16], strides = [1, 1]} : vector<16x64xf32> to vector<8x16xf32>
    %104 = vector.extract_strided_slice %28 {offsets = [8, 16], sizes = [8, 16], strides = [1, 1]} : vector<16x64xf32> to vector<8x16xf32>
    %105 = tpu.concatenate %103, %104 in 0 : vector<8x16xf32>, vector<8x16xf32> -> vector<16x16xf32>
    %cst_33 = arith.constant dense<0.000000e+00> : vector<16x8xf32>
    %106 = tpu.matmul %105, %101, %cst_33 {dimension_numbers = #tpu.dot_dimension_numbers<[1], [1], [0], [0], [0, 0, 1, 0], [], []>} : vector<16x16xf32>, vector<8x16xf32>, vector<16x8xf32> -> vector<16x8xf32>
    %cst_34 = arith.constant 2.500000e-01 : f32
    %107 = vector.broadcast %cst_34 : f32 to vector<16x8xf32>
    %108 = arith.mulf %106, %107 : vector<16x8xf32>
    %cst_35 = arith.constant -1.000000e+09 : f32
    %109 = vector.broadcast %cst_35 : f32 to vector<16x8xf32>
    %110 = arith.select %52, %108, %109 : vector<16x8xi1>, vector<16x8xf32>
    %cst_36 = arith.constant dense<0xFF800000> : vector<16xf32>
    %111 = vector.multi_reduction <maximumf>, %110, %cst_36 [1] : vector<16x8xf32> to vector<16xf32>
    %112 = vector.shape_cast %111 : vector<16xf32> to vector<16x1xf32>
    %113 = vector.broadcast %112 : vector<16x1xf32> to vector<16x8xf32>
    %114 = arith.subf %110, %113 : vector<16x8xf32>
    %115 = math.exp %114 : vector<16x8xf32>
    %cst_37 = arith.constant dense<0.000000e+00> : vector<16xf32>
    %116 = vector.multi_reduction <add>, %115, %cst_37 [1] : vector<16x8xf32> to vector<16xf32>
    %117 = vector.shape_cast %116 : vector<16xf32> to vector<16x1xf32>
    %118 = vector.broadcast %117 : vector<16x1xf32> to vector<16x8xf32>
    %119 = arith.divf %115, %118 : vector<16x8xf32>
    %cst_38 = arith.constant dense<0.000000e+00> : vector<16x16xf32>
    %120 = tpu.matmul %119, %102, %cst_38 {dimension_numbers = #tpu.dot_dimension_numbers<[1], [0], [0], [1], [0, 0, 1, 1], [], []>} : vector<16x8xf32>, vector<8x16xf32>, vector<16x16xf32> -> vector<16x16xf32>
    %121 = vector.extract_strided_slice %120 {offsets = [0, 0], sizes = [8, 16], strides = [1, 1]} : vector<16x16xf32> to vector<8x16xf32>
    %c8 = arith.constant 8 : index
    %c0_39 = arith.constant 0 : index
    %122 = vector.load %arg10[%c8, %c0_39] : memref<16x64xf32, #tpu.memory_space<vmem>>, vector<8x16xf32>
    tpu.vector_store %arg10[%c8, %c0_39], %121 {strides = array<i32>} : memref<16x64xf32, #tpu.memory_space<vmem>>, vector<8x16xf32>,
    %123 = vector.extract_strided_slice %120 {offsets = [8, 0], sizes = [8, 16], strides = [1, 1]} : vector<16x16xf32> to vector<8x16xf32>
    %c8_40 = arith.constant 8 : index
    %c16_41 = arith.constant 16 : index
    %124 = vector.load %arg10[%c8_40, %c16_41] : memref<16x64xf32, #tpu.memory_space<vmem>>, vector<8x16xf32>
    tpu.vector_store %arg10[%c8_40, %c16_41], %123 {strides = array<i32>} : memref<16x64xf32, #tpu.memory_space<vmem>>, vector<8x16xf32>,
    %125 = vector.extract_strided_slice %33 {offsets = [8, 16], sizes = [8, 16], strides = [1, 1]} : vector<16x32xf32> to vector<8x16xf32>
    %126 = vector.extract_strided_slice %21 {offsets = [8, 16], sizes = [8, 16], strides = [1, 1]} : vector<16x32xf32> to vector<8x16xf32>
    %127 = vector.extract_strided_slice %28 {offsets = [8, 32], sizes = [8, 16], strides = [1, 1]} : vector<16x64xf32> to vector<8x16xf32>
    %128 = vector.extract_strided_slice %28 {offsets = [8, 48], sizes = [8, 16], strides = [1, 1]} : vector<16x64xf32> to vector<8x16xf32>
    %129 = tpu.concatenate %127, %128 in 0 : vector<8x16xf32>, vector<8x16xf32> -> vector<16x16xf32>
    %cst_42 = arith.constant dense<0.000000e+00> : vector<16x8xf32>
    %130 = tpu.matmul %129, %125, %cst_42 {dimension_numbers = #tpu.dot_dimension_numbers<[1], [1], [0], [0], [0, 0, 1, 0], [], []>} : vector<16x16xf32>, vector<8x16xf32>, vector<16x8xf32> -> vector<16x8xf32>
    %cst_43 = arith.constant 2.500000e-01 : f32
    %131 = vector.broadcast %cst_43 : f32 to vector<16x8xf32>
    %132 = arith.mulf %130, %131 : vector<16x8xf32>
    %cst_44 = arith.constant -1.000000e+09 : f32
    %133 = vector.broadcast %cst_44 : f32 to vector<16x8xf32>
    %134 = arith.select %52, %132, %133 : vector<16x8xi1>, vector<16x8xf32>
    %cst_45 = arith.constant dense<0xFF800000> : vector<16xf32>
    %135 = vector.multi_reduction <maximumf>, %134, %cst_45 [1] : vector<16x8xf32> to vector<16xf32>
    %136 = vector.shape_cast %135 : vector<16xf32> to vector<16x1xf32>
    %137 = vector.broadcast %136 : vector<16x1xf32> to vector<16x8xf32>
    %138 = arith.subf %134, %137 : vector<16x8xf32>
    %139 = math.exp %138 : vector<16x8xf32>
    %cst_46 = arith.constant dense<0.000000e+00> : vector<16xf32>
    %140 = vector.multi_reduction <add>, %139, %cst_46 [1] : vector<16x8xf32> to vector<16xf32>
    %141 = vector.shape_cast %140 : vector<16xf32> to vector<16x1xf32>
    %142 = vector.broadcast %141 : vector<16x1xf32> to vector<16x8xf32>
    %143 = arith.divf %139, %142 : vector<16x8xf32>
    %cst_47 = arith.constant dense<0.000000e+00> : vector<16x16xf32>
    %144 = tpu.matmul %143, %126, %cst_47 {dimension_numbers = #tpu.dot_dimension_numbers<[1], [0], [0], [1], [0, 0, 1, 1], [], []>} : vector<16x8xf32>, vector<8x16xf32>, vector<16x16xf32> -> vector<16x16xf32>
    %145 = vector.extract_strided_slice %144 {offsets = [0, 0], sizes = [8, 16], strides = [1, 1]} : vector<16x16xf32> to vector<8x16xf32>
    %c8_48 = arith.constant 8 : index
    %c32_49 = arith.constant 32 : index
    %146 = vector.load %arg10[%c8_48, %c32_49] : memref<16x64xf32, #tpu.memory_space<vmem>>, vector<8x16xf32>
    tpu.vector_store %arg10[%c8_48, %c32_49], %145 {strides = array<i32>} : memref<16x64xf32, #tpu.memory_space<vmem>>, vector<8x16xf32>,
    %147 = vector.extract_strided_slice %144 {offsets = [8, 0], sizes = [8, 16], strides = [1, 1]} : vector<16x16xf32> to vector<8x16xf32>
    %c8_50 = arith.constant 8 : index
    %c48_51 = arith.constant 48 : index
    %148 = vector.load %arg10[%c8_50, %c48_51] : memref<16x64xf32, #tpu.memory_space<vmem>>, vector<8x16xf32>
    tpu.vector_store %arg10[%c8_50, %c48_51], %147 {strides = array<i32>} : memref<16x64xf32, #tpu.memory_space<vmem>>, vector<8x16xf32>,
    %c0_52 = arith.constant 0 : index
    %c0_53 = arith.constant 0 : index
    %149 = vector.load %arg10[%c0_52, %c0_53] : memref<16x64xf32, #tpu.memory_space<vmem>>, vector<16x64xf32>
    %c0_54 = arith.constant 0 : index
    %c0_55 = arith.constant 0 : index
    %150 = vector.load %arg5[%c0_54, %c0_55] : memref<64x64xf32, #tpu.memory_space<vmem>>, vector<64x64xf32>
    %cst_56 = arith.constant dense<0.000000e+00> : vector<16x64xf32>
    %151 = tpu.matmul %149, %150, %cst_56 {dimension_numbers = #tpu.dot_dimension_numbers<[1], [0], [0], [1], [0, 0, 1, 1], [], []>} : vector<16x64xf32>, vector<64x64xf32>, vector<16x64xf32> -> vector<16x64xf32>
    %152 = arith.addf %0, %151 : vector<16x64xf32>
    %153 = arith.mulf %152, %152 : vector<16x64xf32>
    %cst_57 = arith.constant dense<0.000000e+00> : vector<16xf32>
    %154 = vector.multi_reduction <add>, %153, %cst_57 [1] : vector<16x64xf32> to vector<16xf32>
    %155 = vector.shape_cast %154 : vector<16xf32> to vector<16x1xf32>
    %cst_58 = arith.constant 6.400000e+01 : f32
    %156 = vector.broadcast %cst_58 : f32 to vector<16x1xf32>
    %157 = arith.divf %155, %156 : vector<16x1xf32>
    %cst_59 = arith.constant 9.99999997E-7 : f32
    %158 = vector.broadcast %cst_59 : f32 to vector<16x1xf32>
    %159 = arith.addf %157, %158 : vector<16x1xf32>
    %160 = math.rsqrt %159 : vector<16x1xf32>
    %161 = vector.broadcast %160 : vector<16x1xf32> to vector<16x64xf32>
    %162 = arith.mulf %152, %161 : vector<16x64xf32>
    %c1 = arith.constant 1 : index
    %c0_60 = arith.constant 0 : index
    %163 = vector.load %arg2[%c1, %c0_60] : memref<2x64xf32, #tpu.memory_space<vmem>>, vector<1x64xf32>
    %164 = vector.broadcast %163 : vector<1x64xf32> to vector<16x64xf32>
    %165 = arith.mulf %162, %164 : vector<16x64xf32>
    %cst_61 = arith.constant 8.193000e+03 : f32
    %166 = vector.broadcast %cst_61 : f32 to vector<16x64xf32>
    %167 = arith.mulf %165, %166 : vector<16x64xf32>
    %168 = arith.subf %167, %165 : vector<16x64xf32>
    %169 = arith.subf %167, %168 : vector<16x64xf32>
    %c0_62 = arith.constant 0 : index
    %c0_63 = arith.constant 0 : index
    %170 = vector.load %arg6[%c0_62, %c0_63] : memref<64x256xf32, #tpu.memory_space<vmem>>, vector<64x256xf32>
    %cst_64 = arith.constant dense<0.000000e+00> : vector<16x256xf32>
    %171 = tpu.matmul %169, %170, %cst_64 {dimension_numbers = #tpu.dot_dimension_numbers<[1], [0], [0], [1], [0, 0, 1, 1], [], []>} : vector<16x64xf32>, vector<64x256xf32>, vector<16x256xf32> -> vector<16x256xf32>
    %172 = vector.extract_strided_slice %171 {offsets = [0, 0], sizes = [16, 128], strides = [1, 1]} : vector<16x256xf32> to vector<16x128xf32>
    %173 = vector.extract_strided_slice %171 {offsets = [0, 128], sizes = [16, 128], strides = [1, 1]} : vector<16x256xf32> to vector<16x128xf32>
    %174 = arith.negf %172 : vector<16x128xf32>
    %175 = math.exp %174 : vector<16x128xf32>
    %cst_65 = arith.constant 1.000000e+00 : f32
    %176 = vector.broadcast %cst_65 : f32 to vector<16x128xf32>
    %177 = arith.addf %176, %175 : vector<16x128xf32>
    %178 = arith.divf %176, %177 : vector<16x128xf32>
    %179 = arith.mulf %172, %178 : vector<16x128xf32>
    %180 = arith.mulf %179, %173 : vector<16x128xf32>
    %c0_66 = arith.constant 0 : index
    %c0_67 = arith.constant 0 : index
    %181 = vector.load %arg7[%c0_66, %c0_67] : memref<128x64xf32, #tpu.memory_space<vmem>>, vector<128x64xf32>
    %cst_68 = arith.constant dense<0.000000e+00> : vector<16x64xf32>
    %182 = tpu.matmul %180, %181, %cst_68 {dimension_numbers = #tpu.dot_dimension_numbers<[1], [0], [0], [1], [0, 0, 1, 1], [], []>} : vector<16x128xf32>, vector<128x64xf32>, vector<16x64xf32> -> vector<16x64xf32>
    %183 = arith.addf %152, %182 : vector<16x64xf32>
    %c0_69 = arith.constant 0 : index
    %c0_70 = arith.constant 0 : index
    %184 = vector.load %arg9[%c0_69, %c0_70] : memref<16x64xf32, #tpu.memory_space<vmem>>, vector<16x64xf32>
    tpu.vector_store %arg9[%c0_69, %c0_70], %183 {strides = array<i32>} : memref<16x64xf32, #tpu.memory_space<vmem>>, vector<16x64xf32>,
    return
  }
  func.func @transform_0(%arg0: i32) -> (i32, i32) {
    %c0_i32 = arith.constant 0 : i32
    %c0_i32_0 = arith.constant 0 : i32
    %c0_i32_1 = arith.constant 0 : i32
    return %c0_i32, %c0_i32_0 : i32, i32
  }
  func.func @transform_1(%arg0: i32) -> (i32, i32) {
    %c0_i32 = arith.constant 0 : i32
    %c0_i32_0 = arith.constant 0 : i32
    %c0_i32_1 = arith.constant 0 : i32
    return %c0_i32, %c0_i32_0 : i32, i32
  }
  func.func @transform_2(%arg0: i32) -> (i32, i32) {
    %c0_i32 = arith.constant 0 : i32
    %c0_i32_0 = arith.constant 0 : i32
    %c0_i32_1 = arith.constant 0 : i32
    return %c0_i32, %c0_i32_0 : i32, i32
  }
  func.func @transform_3(%arg0: i32) -> (i32, i32) {
    %c0_i32 = arith.constant 0 : i32
    %c0_i32_0 = arith.constant 0 : i32
    %c0_i32_1 = arith.constant 0 : i32
    return %c0_i32, %c0_i32_0 : i32, i32
  }
  func.func @transform_4(%arg0: i32) -> (i32, i32) {
    %c0_i32 = arith.constant 0 : i32
    %c0_i32_0 = arith.constant 0 : i32
    %c0_i32_1 = arith.constant 0 : i32
    return %c0_i32, %c0_i32_0 : i32, i32
  }
  func.func @transform_5(%arg0: i32) -> (i32, i32) {
    %c0_i32 = arith.constant 0 : i32
    %c0_i32_0 = arith.constant 0 : i32
    %c0_i32_1 = arith.constant 0 : i32
    return %c0_i32, %c0_i32_0 : i32, i32
  }
  func.func @transform_6(%arg0: i32) -> (i32, i32) {
    %c0_i32 = arith.constant 0 : i32
    %c0_i32_0 = arith.constant 0 : i32
    %c0_i32_1 = arith.constant 0 : i32
    return %c0_i32, %c0_i32_0 : i32, i32
  }
  func.func @transform_7(%arg0: i32) -> (i32, i32) {
    %c0_i32 = arith.constant 0 : i32
    %c0_i32_0 = arith.constant 0 : i32
    %c0_i32_1 = arith.constant 0 : i32
    return %c0_i32, %c0_i32_0 : i32, i32
  }
  func.func @transform_8(%arg0: i32) -> (i32, i32) {
    %c0_i32 = arith.constant 0 : i32
    %c0_i32_0 = arith.constant 0 : i32
    %c0_i32_1 = arith.constant 0 : i32
    return %c0_i32, %c0_i32_0 : i32, i32
  }
}

</mosaic_0001>

<bundles_post_ra>
// kernel: tile.19
= control target key start
LH: loop header
LB: loop body
LE: loop exit
PB: predicated region body
PF: predicated region fallthrough
CT: control target
= control target key end

     0   :  { %vm42_vm0 = vcmask 1047556   ;;  %vm44_vm1 = vcmask 130048   ;;  %s93_s22 = smov 16   ;;  %s94_s25 = smov 32   ;;  %vm54_vm2 = vcmask 523648   ;;  %vm64_vm3 = vcmask 392448   ;;  %s146_s0 = inlined_call_operand.vmem [shape: f32[8,4,16], index: 0, kind: input, shape index: {}]   ;;  %s147_s1 = inlined_call_operand.vmem [shape: f32[8,64], index: 1, kind: output, shape index: {}]  }
   0x1   :  { %v82_v0 = vld [vmem:[%s146_s0 + $0x1c] sm:$0xf]  ;;  %v83_v1 = vld [vmem:[%s146_s0 + $0x18] sm:$0xf]  ;;  %v84_v2 = vld [vmem:[%s146_s0 + $0x14] sm:$0xf] }
   0x2   :  { %8 = vst [vmem:[#allocation0 + $0x38] sm:$0xf] %v82_v0  ;;  %13 = vst [vmem:[#allocation0 + $0x30] sm:$0xf] %v83_v1  ;;  %v85_v3 = vld [vmem:[%s146_s0 + $0x10] sm:$0xf] }
   0x3   :  { %18 = vst [vmem:[#allocation0 + $0x28] sm:$0xf] %v84_v2  ;;  %v86_v4 = vld [vmem:[%s146_s0 + $0xc] sm:$0xf]  ;;  %v87_v5 = vld [vmem:[%s146_s0 + $0x8] sm:$0xf] }
   0x4   :  { %23 = vst [vmem:[#allocation0 + $0x20] sm:$0xf] %v85_v3  ;;  %28 = vst [vmem:[#allocation0 + $0x18] sm:$0xf] %v86_v4  ;;  %v88_v6 = vld [vmem:[%s146_s0 + $0x4] sm:$0xf] }
   0x5   :  { %33 = vst [vmem:[#allocation0 + $0x10] sm:$0xf] %v87_v5  ;;  %v38_v7 = vld [vmem:[%s146_s0] sm:$0xf]  ;;  %37 = vst [vmem:[#allocation0 + $0x8] sm:$0xf] %v88_v6 }
   0x6   :  { %39 = vst [vmem:[#allocation0] sm:$0xf] %v38_v7  ;;  %s92_s0 = smov 48   ;;  %vm74_vm4 = vcmask 261248  }
   0xb   :  { %v49_v8 = vld [vmem:[#allocation0 + $0x3] ss:$8 sm:$0xf0]   ;;  %v59_v9 = vld [vmem:[#allocation0 + $0x2] ss:$8 sm:$0xf0]  }
   0xc   :  { %v69_v14 = vld [vmem:[#allocation0 + $0x1] ss:$8 sm:$0xf0]   ;;  %v41_v17 = vld [vmem:[#allocation0] ss:$8 sm:$0xf0]  }
   0xd   :  { %v47_v10 = vld [vmem:[#allocation0 + $0x3] ss:$8 sm:$0xf]   ;;  %v57_v11 = vld [vmem:[#allocation0 + $0x2] ss:$8 sm:$0xf]  }
   0xe   :  { %v51_v12 = vsel %vm42_vm0, %v49_v8, %v47_v10  ;;  %v67_v13 = vld [vmem:[#allocation0 + $0x1] ss:$8 sm:$0xf]   ;;  %v40_v16 = vld [vmem:[#allocation0] ss:$8 sm:$0xf]   ;;  %v61_v18 = vsel %vm42_vm0, %v59_v9, %v57_v11 }
   0xf   :  { %52 = vrot.lane.b32.xlu0 %v51_v12, %s92_s0  ;;  %v71_v15 = vsel %vm42_vm0, %v69_v14, %v67_v13  ;;  %v43_v19 = vsel %vm42_vm0, %v41_v17, %v40_v16 }
  0x10   :  { %72 = vrot.lane.b32.xlu1 %v71_v15, %s93_s22  ;;  %45 = vst.msk [vmem:[%s147_s1] sm:$0xff] %vm44_vm1, %v43_v19  }
  0x13   :  { %62 = vrot.lane.b32.xlu0 %v61_v18, %s94_s25 }
  0x81   :  { %v53_v20 = vpop.permute.xlu0 %52  }
  0x82   :  { %55 = vst.msk [vmem:[%s147_s1] sm:$0xff] %vm54_vm2, %v53_v20   ;;  %v73_v21 = vpop.permute.xlu1 %72  }
  0x85   :  { %v63_v22 = vpop.permute.xlu0 %62  }
  0x86   :  { %65 = vst.msk [vmem:[%s147_s1] sm:$0xff] %vm64_vm3, %v63_v22  }
  0x87   :  { %75 = vst.msk [vmem:[%s147_s1] sm:$0xff] %vm74_vm4, %v73_v21  }

// kernel: decoder_layer_forward.1
= control target key start
LH: loop header
LB: loop body
LE: loop exit
PB: predicated region body
PF: predicated region fallthrough
CT: control target
= control target key end

     0   :  { %13 = vsyncpa [#allocation4], 0  ;;  %s2206_s0 = inlined_call_operand.vmem [shape: f32[16,64], index: 0, kind: input, shape index: {}]   ;;  %s2207_s1 = inlined_call_operand.vmem [shape: f32[2,64], index: 1, kind: input, shape index: {}]   ;;  %s2208_s2 = inlined_call_operand.vmem [shape: f32[64,224], index: 2, kind: input, shape index: {}]   ;;  %s2209_s3 = inlined_call_operand.hbm [shape: f32[1,224], index: 3, kind: input, shape index: {}]   ;;  %s2210_s4 = inlined_call_operand.vmem [shape: f32[64,64], index: 4, kind: input, shape index: {}]   ;;  %s2211_s5 = inlined_call_operand.vmem [shape: f32[64,256], index: 5, kind: input, shape index: {}]   ;;  %s2212_s6 = inlined_call_operand.vmem [shape: f32[128,64], index: 6, kind: input, shape index: {}]   ;;  %s2213_s7 = inlined_call_operand.vmem [shape: f32[16,128], index: 7, kind: input, shape index: {}]   ;;  %s2214_s8 = inlined_call_operand.hbm [shape: f32[16,64], index: 8, kind: output, shape index: {}]  }
   0x1   :  { %14 = vsyncpa [#allocation5], 0  ;;  %s1772_s27 = smov [#allocation3]   ;;  %s1724_s9 = scalar_lea.hbm %s2209_s3, 32 }
   0x2   :  { %s27_s28 = sshll.u32 %s1772_s27, 4  ;;  %p1725_p0 = scmp.ne.s32.totalorder %s2209_s3, %s1724_s9  ;;  %s28_s28 = int_to_ptr.vmem [resolvable:$true] %s27_s28 }
   0x3   :  { %p1728_p1 = scmp.lt.u32.totalorder %s1724_s9, %s2209_s3 }
   0x5   :  { %p1730_p2 = pnand %p1728_p1, %p1725_p0 }
   0x7   :  { %1733 = shalt.err (!%p1730_p2)
}
   0x8   :  { %s1734_s14 = scalar_lea.vmem %s28_s28, 32  ;;  %p1739_p4 = scmp.lt.s32.totalorder %s28_s28, %s28_s28 }
   0x9   :  { %p1735_p3 = scmp.ne.s32.totalorder %s28_s28, %s1734_s14  ;;  %p1740_p5 = scmp.lt.s32.totalorder %s1734_s14, %s1734_s14 }
   0xb   :  { %p1741_p6 = por %p1740_p5, %p1739_p4 }
   0xd   :  { %p1742_p7 = pnand %p1741_p6, %p1735_p3 }
   0xf   :  { %1745 = shalt.err (!%p1742_p7)
}
  0x10   :  { %30 = dma.hbm_to_vmem [thread:$0]  %s2209_s3, 32, %s28_s28, [#allocation4]  }
  0x11   :  { %1768 = dma.done.wait [#allocation4], 32  }
  0x12   :  { %1769 = vsyncadd [#allocation4], 4294967264  ;;  %v1843_v0 = vld [vmem:[%s2206_s0] sm:$0xff]  ;;  %vm46_vm0 = vcmask 523264   ;;  %v70_v3 = vld [vmem:[%s2208_s2 + $0x8] sm:$0xff]  ;;  %v1773_v16 = vmov 0.0   ;;  %v87_v36 = vlaneseq }
  0x13   :  { %v44_v1 = vmul.f32 %v1843_v0, %v1843_v0  ;;  %v72_v4 = vld [vmem:[%s2208_s2 + $0x18] sm:$0xff]  ;;  %v69_v6 = vld [vmem:[%s2208_s2] sm:$0xff]  ;;  %v71_v7 = vld [vmem:[%s2208_s2 + $0x10] sm:$0xff]  ;;  %167 = vmatprep.mubr.f32.mxu0 %v1773_v16  ;;  %s1774_s29 = smov 64   ;;  %vm239_vm1 = vcmask 130048   ;;  %vm325_vm3 = vcmask 64512  }
  0x14   :  { %v1585_v5 = vpack.c.bf16 %v72_v4, %v70_v3  ;;  %v1587_v8 = vpack.c.bf16 %v71_v7, %v69_v6  ;;  %v74_v9 = vld [vmem:[%s2208_s2 + $0x28] sm:$0xff]  ;;  %v76_v10 = vld [vmem:[%s2208_s2 + $0x38] sm:$0xff]  ;;  %v73_v11 = vld [vmem:[%s2208_s2 + $0x20] sm:$0xff]  ;;  %v88_v37 = vshrl.u32 %v87_v36, 7  ;;  %v206_v57 = vand.u32 127, %v87_v36  ;;  %s1776_s10 = smov 32  }
  0x15   :  { %v47_v2 = vsel %vm46_vm0, %v44_v1, 0.0  ;;  %v1589_v12 = vpack.c.bf16 %v76_v10, %v74_v9  ;;  %v75_v13 = vld [vmem:[%s2208_s2 + $0x30] sm:$0xff]  ;;  %v78_v14 = vld [vmem:[%s2208_s2 + $0x48] sm:$0xff]  ;;  %v80_v15 = vld [vmem:[%s2208_s2 + $0x58] sm:$0xff]  ;;  %s1777_s11 = smov 48   ;;  %s1778_s12 = smov 96  }
  0x16   :  { %48 = vadd.xlane.f32.xlu0 %v47_v2  ;;  %1586 = vmatprep.subr.bf16.mxu0 %v1585_v5  ;;  %v1591_v17 = vpack.c.bf16 %v75_v13, %v73_v11  ;;  %v1593_v18 = vpack.c.bf16 %v80_v15, %v78_v14  ;;  %v77_v19 = vld [vmem:[%s2208_s2 + $0x40] sm:$0xff]  ;;  %v79_v20 = vld [vmem:[%s2208_s2 + $0x50] sm:$0xff]  ;;  %v82_v21 = vld [vmem:[%s2208_s2 + $0x68] sm:$0xff]  ;;  %v89_v38 = vsub.s32 0, %v88_v37  ;;  %v93_v40 = vsub.s32 1, %v88_v37 }
  0x17   :  { %1588 = vmatpush1.bf16.msra.mxu0 %v1587_v8  ;;  %v84_v22 = vld [vmem:[%s2208_s2 + $0x78] sm:$0xff]  ;;  %v1595_v23 = vpack.c.bf16 %v79_v20, %v77_v19  ;;  %v81_v25 = vld [vmem:[%s2208_s2 + $0x60] sm:$0xff]  ;;  %v83_v26 = vld [vmem:[%s2208_s2 + $0x70] sm:$0xff]  ;;  %s1775_s2 = smov 112   ;;  %v204_v56 = vadd.s32 8, %v88_v37  ;;  %v211_v59 = vand.u32 7, %v88_v37 }
  0x18   :  { %1590 = vmatprep.subr.bf16.mxu0 %v1589_v12  ;;  %v1597_v24 = vpack.c.bf16 %v84_v22, %v82_v21  ;;  %v1599_v27 = vpack.c.bf16 %v83_v26, %v81_v25  ;;  %v180_v28 = vld [vmem:[%s2213_s7] sm:$0xff]  ;;  %v85_v39 = vld [vmem:[#allocation3] sm:$0x3]  ;;  %v1951_v20 = vld [vmem:[%s2206_s0 + $0x8] sm:$0xff]  ;;  %vm438_vm5 = vcmask 261248   ;;  %vm641_vm6 = vcmask 392448  }
  0x19   :  { %v1904_v33 = vld [vmem:[%s2207_s1] ss:$0 sm:$0xff]  ;;  %v1910_v41 = vrot.slane %v85_v39, %v89_v38  ;;  %v1912_v42 = vrot.slane %v85_v39, %v93_v40  ;;  %v218_v58 = vand.u32 7, %v204_v56  ;;  %vm1930_vm4 = vcmp.ge.s32.totalorder %v211_v59, %v206_v57  ;;  %v181_v38 = vld [vmem:[%s2213_s7 + $0x8] sm:$0xff]  ;;  %s1779_s7 = smov 16  }
  0x1a   :  { %v45_v21 = vmul.f32 %v1951_v20, %v1951_v20  ;;  %vm647_vm7 = vcmask 523648  }
  0x1b   :  { %1592 = vmatpush1.bf16.msra.mxu0 %v1591_v17  ;;  %vm1926_vm2 = vcmp.ge.s32.totalorder %v218_v58, %v206_v57 }
  0x1c   :  { %1594 = vmatprep.subr.bf16.mxu0 %v1593_v18  ;;  %v50_v22 = vsel %vm46_vm0, %v45_v21, 0.0 }
  0x1f   :  { %1596 = vmatpush1.bf16.msra.mxu0 %v1595_v23 }
  0x20   :  { %1598 = vmatprep.subr.bf16.mxu0 %v1597_v24 }
  0x23   :  { %1600 = vmatpush1.bf16.msra.mxu0 %v1599_v27 }
  0x2c   :  { %186 = vrot.lane.b32.xlu0 %v180_v28, %s1774_s29 }
  0xa3   :  { %v49_v29 = vpop.xlane.xlu0 %48 }
  0xa4   :  { %v54_v30 = vmul.f32 0.015625, %v49_v29 }
  0xa6   :  { %v56_v31 = vadd.f32 1e-06, %v54_v30 }
  0xa7   :  { %v187_v44 = vpop.permute.xlu0 %186 }
  0xa8   :  { %1676 = vrsqrt.f32 %v56_v31 }
  0xb2   :  { %v1677_v32 = vpop.eup %1676 }
  0xb3   :  { %v60_v34 = vmul.f32 %v1677_v32, %v1843_v0 }
  0xb5   :  { %v67_v35 = vmul.f32 %v1904_v33, %v60_v34 }
  0xb7   :  { %1410 = vmatmul.mubr.msk.f32.vlgmr.msra.gmra.mrb[0].mxu0 %vm46_vm0, %v67_v35 }
  0xb8   :  { %173 = vmatprep.mubr.f32.mxu0 %v1773_v16 }
 0x18a   :  { %v169_v43 = vpop.f32.mrb[0].mxu0 }
 0x18b   :  { %v1915_v45 = vadd.f32 %v169_v43, %v1910_v41  ;;  %v171_v46 = vpop.f32.mrb[1].mxu0 }
 0x18c   :  { %v172_v47 = vadd.f32 %v171_v46, %v1912_v42 }
 0x18d   :  { %v182_v48 = vmul.f32 %v180_v28, %v1915_v45  ;;  %v196_v49 = vmul.f32 %v187_v44, %v1915_v45 }
 0x18e   :  { %v198_v50 = vmul.f32 %v180_v28, %v172_v47  ;;  %v192_v51 = vmul.f32 %v187_v44, %v172_v47 }
 0x190   :  { %v194_v52 = vadd.f32 %v192_v51, %v182_v48  ;;  %v200_v53 = vadd.f32 %v198_v50, %v196_v49 }
 0x192   :  { %237 = vrot.lane.b32.xlu1 %v200_v53, %s1774_s29  ;;  %1493 = vmatprep.mubr.msk.f32.mxu1 %vm239_vm1, %v194_v52 }
 0x196   :  { %234 = vrot.lane.b32.xlu1 %v194_v52, %s1775_s2 }
 0x204   :  { %v238_v54 = vpop.permute.xlu1 %237 }
 0x205   :  { %1491 = vmatprep.subr.msk.mxu1 %vm239_vm1, %v238_v54 }
 0x206   :  { %1492 = vmatpush3.xpose.msk.msra.mxu1 %vm239_vm1, %v238_v54 }
 0x208   :  { %v235_v55 = vpop.permute.xlu1 %234 }
 0x209   :  { %1494 = vmatmul.mubr.msk.f32.vlgmr.msra.gmra.mrb[0].mxu1 %vm239_vm1, %v235_v55 }
 0x2dc   :  { %v1495_v60 = vpop.f32.mrb[0].mxu1 }
 0x2dd   :  { %v322_v62 = vmul.f32 0.25, %v1495_v60  ;;  %v312_v63 = vpop.f32.mrb[1].mxu1 }
 0x2de   :  { %v321_v2 = vmul.f32 0.25, %v312_v63 }
 0x2df   :  { %v324_v3 = vsel %vm1926_vm2, %v322_v62, -1e+09 }
 0x2e0   :  { %v329_v4 = vsel %vm325_vm3, %v324_v3, -inf  ;;  %v323_v5 = vsel %vm1930_vm4, %v321_v2, -1e+09 }
 0x2e1   :  { %330 = vmax.xlane.f32.xlu0 %v329_v4  ;;  %v326_v6 = vsel %vm325_vm3, %v323_v5, -inf }
 0x2e2   :  { %327 = vmax.xlane.f32.xlu1 %v326_v6 }
 0x2f3   :  { %349 = vrot.lane.b32.xlu1 %v1915_v45, %s1776_s10 }
 0x2f7   :  { %444 = vrot.lane.b32.xlu0 %v200_v53, %s1777_s11  ;;  %440 = vrot.lane.b32.xlu1 %v194_v52, %s1778_s12 }
 0x36e   :  { %v331_v7 = vpop.xlane.xlu0 %330 }
 0x36f   :  { %v333_v8 = vsub.f32 %v324_v3, %v331_v7  ;;  %v328_v9 = vpop.xlane.xlu1 %327 }
 0x370   :  { %v332_v10 = vsub.f32 %v323_v5, %v328_v9 }
 0x371   :  { %v336_v11 = vmul.f32 1.442695, %v333_v8 }
 0x372   :  { %v334_v12 = vmul.f32 1.442695, %v332_v10  ;;  %v445_v14 = vpop.permute.xlu0 %444 }
 0x373   :  { %1678 = vpow2.f32 %v336_v11  ;;  %v350_v13 = vpop.permute.xlu1 %349 }
 0x374   :  { %1496 = vmatprep.subr.mxu1 %v350_v13  ;;  %1680 = vpow2.f32 %v334_v12 }
 0x375   :  { %1497 = vmatpush3.msra.mxu1 %v350_v13 }
 0x376   :  { %1501 = vmatprep.subr.msk.mxu1 %vm239_vm1, %v445_v14 }
 0x377   :  { %v441_v23 = vpop.permute.xlu1 %440 }
 0x37d   :  { %v1679_v15 = vpop.eup %1678 }
 0x37e   :  { %v341_v17 = vsel %vm325_vm3, %v1679_v15, 0.0  ;;  %v1681_v18 = vpop.eup %1680 }
 0x37f   :  { %342 = vadd.xlane.f32.xlu1 %v341_v17  ;;  %v338_v19 = vsel %vm325_vm3, %v1681_v18, 0.0 }
 0x383   :  { %339 = vadd.xlane.f32.xlu1 %v338_v19 }
 0x394   :  { %442 = vrot.lane.b32.xlu1 %v235_v55, %s1778_s12 }
 0x3b8   :  { %51 = vadd.xlane.f32.xlu1 %v50_v22 }
 0x3c9   :  { %188 = vrot.lane.b32.xlu1 %v181_v38, %s1774_s29 }
 0x40c   :  { %v343_v24 = vpop.xlane.xlu1 %342 }
 0x40d   :  { %1682 = vrcp.f32 %v343_v24 }
 0x410   :  { %v340_v25 = vpop.xlane.xlu1 %339 }
 0x411   :  { %1684 = vrcp.f32 %v340_v25 }
 0x414   :  { %v443_v30 = vpop.permute.xlu1 %442 }
 0x417   :  { %v1683_v26 = vpop.eup %1682 }
 0x418   :  { %v347_v29 = vmul.f32 %v1683_v26, %v1679_v15 }
 0x41b   :  { %v1685_v27 = vpop.eup %1684 }
 0x41c   :  { %v345_v28 = vmul.f32 %v1685_v27, %v1681_v18 }
 0x41e   :  { %1498 = vmatprep.mubr.msk.f32.mxu1 %vm325_vm3, %v345_v28 }
 0x41f   :  { %1499 = vmatmul.mubr.msk.f32.vlgmr.msra.gmra.mrb[2].mxu1 %vm325_vm3, %v347_v29 }
 0x420   :  { %1502 = vmatpush3.xpose.msk.msra.mxu1 %vm239_vm1, %v445_v14  ;;  %1503 = vmatprep.mubr.msk.f32.mxu1 %vm239_vm1, %v441_v23 }
 0x423   :  { %1504 = vmatmul.mubr.msk.f32.vlgmr.msra.gmra.mrb[4].mxu1 %vm239_vm1, %v443_v30 }
 0x445   :  { %v52_v31 = vpop.xlane.xlu1 %51 }
 0x446   :  { %v55_v32 = vmul.f32 0.015625, %v52_v31 }
 0x448   :  { %v57_v34 = vadd.f32 1e-06, %v55_v32 }
 0x449   :  { %v189_v52 = vpop.permute.xlu1 %188 }
 0x44a   :  { %1686 = vrsqrt.f32 %v57_v34 }
 0x454   :  { %v1687_v35 = vpop.eup %1686 }
 0x455   :  { %v61_v36 = vmul.f32 %v1687_v35, %v1951_v20 }
 0x457   :  { %v68_v37 = vmul.f32 %v1904_v33, %v61_v36 }
 0x459   :  { %1411 = vmatmul.mubr.msk.f32.gmra.mrb[2].mxu0 %vm46_vm0, %v68_v37 }
 0x4f2   :  { %v1968_v39 = vpop.f32.mrb[2].mxu1 }
 0x4f3   :  { %v424_v40 = vpop.f32.mrb[3].mxu1 }
 0x4f4   :  { %433 = vst.msk [vmem:[#allocation2] sm:$0xff] %vm239_vm1, %v424_v40 }
 0x4f6   :  { %v1505_v43 = vpop.f32.mrb[4].mxu1 }
 0x4f7   :  { %v518_v44 = vpop.f32.mrb[5].mxu1  ;;  %v528_v46 = vmul.f32 0.25, %v1505_v43 }
 0x4f8   :  { %v527_v47 = vmul.f32 0.25, %v518_v44 }
 0x4f9   :  { %v530_v49 = vsel %vm1926_vm2, %v528_v46, -1e+09 }
 0x4fa   :  { %v529_v33 = vsel %vm1930_vm4, %v527_v47, -1e+09  ;;  %v534_v50 = vsel %vm325_vm3, %v530_v49, -inf }
 0x4fb   :  { %v531_v48 = vsel %vm325_vm3, %v529_v33, -inf }
 0x4fc   :  { %532 = vmax.xlane.f32.xlu0 %v531_v48 }
 0x500   :  { %535 = vmax.xlane.f32.xlu0 %v534_v50 }
 0x52c   :  { %v175_v51 = vpop.f32.mrb[2].mxu0 }
 0x52d   :  { %v1978_v53 = vadd.f32 %v175_v51, %v1910_v41  ;;  %v177_v54 = vpop.f32.mrb[3].mxu0 }
 0x52e   :  { %v178_v55 = vadd.f32 %v177_v54, %v1912_v42 }
 0x52f   :  { %v197_v56 = vmul.f32 %v189_v52, %v1978_v53  ;;  %v183_v58 = vmul.f32 %v181_v38, %v1978_v53 }
 0x530   :  { %v199_v57 = vmul.f32 %v181_v38, %v178_v55  ;;  %v193_v59 = vmul.f32 %v189_v52, %v178_v55 }
 0x532   :  { %v1983_v60 = vadd.f32 %v199_v57, %v197_v56  ;;  %v195_v62 = vadd.f32 %v193_v59, %v183_v58 }
 0x534   :  { %653 = vrot.lane.b32.xlu1 %v1983_v60, %s1774_s29 }
 0x538   :  { %650 = vrot.lane.b32.xlu1 %v195_v62, %s1775_s2 }
 0x589   :  { %v533_v63 = vpop.xlane.xlu0 %532 }
 0x58a   :  { %v537_v41 = vsub.f32 %v529_v33, %v533_v63 }
 0x58c   :  { %v539_v4 = vmul.f32 1.442695, %v537_v41 }
 0x58d   :  { %v536_v2 = vpop.xlane.xlu0 %535 }
 0x58e   :  { %v538_v3 = vsub.f32 %v530_v49, %v536_v2 }
 0x590   :  { %v541_v42 = vmul.f32 1.442695, %v538_v3 }
 0x592   :  { %1688 = vpow2.f32 %v541_v42 }
 0x593   :  { %1690 = vpow2.f32 %v539_v4 }
 0x59c   :  { %v1689_v5 = vpop.eup %1688 }
 0x59d   :  { %v546_v6 = vsel %vm325_vm3, %v1689_v5, 0.0  ;;  %v1691_v7 = vpop.eup %1690 }
 0x59e   :  { %547 = vadd.xlane.f32.xlu0 %v546_v6  ;;  %v543_v8 = vsel %vm325_vm3, %v1691_v7, 0.0 }
 0x5a2   :  { %544 = vadd.xlane.f32.xlu0 %v543_v8 }
 0x5a6   :  { %v654_v12 = vpop.permute.xlu1 %653 }
 0x5b8   :  { %553 = vrot.lane.b32.xlu0 %v1915_v45, %s1779_s7  ;;  %v651_v45 = vpop.permute.xlu1 %650 }
 0x62b   :  { %v548_v9 = vpop.xlane.xlu0 %547 }
 0x62c   :  { %1692 = vrcp.f32 %v548_v9 }
 0x62f   :  { %v545_v10 = vpop.xlane.xlu0 %544 }
 0x630   :  { %1694 = vrcp.f32 %v545_v10 }
 0x633   :  { %v554_v11 = vpop.permute.xlu0 %553 }
 0x634   :  { %1506 = vmatprep.subr.mxu1 %v554_v11 }
 0x635   :  { %1507 = vmatpush3.msra.mxu1 %v554_v11 }
 0x636   :  { %1511 = vmatprep.subr.msk.mxu1 %vm239_vm1, %v654_v12  ;;  %v1693_v13 = vpop.eup %1692 }
 0x637   :  { %v552_v17 = vmul.f32 %v1693_v13, %v1689_v5 }
 0x63a   :  { %v1695_v14 = vpop.eup %1694 }
 0x63b   :  { %v550_v15 = vmul.f32 %v1695_v14, %v1691_v7 }
 0x63d   :  { %1508 = vmatprep.mubr.msk.f32.mxu1 %vm325_vm3, %v550_v15 }
 0x63e   :  { %1509 = vmatmul.mubr.msk.f32.vlgmr.msra.gmra.mrb[6].mxu1 %vm325_vm3, %v552_v17 }
 0x63f   :  { %1512 = vmatpush3.xpose.msk.msra.mxu1 %vm239_vm1, %v654_v12  ;;  %1513 = vmatprep.mubr.msk.f32.mxu1 %vm239_vm1, %v195_v62 }
 0x642   :  { %1514 = vmatmul.mubr.msk.f32.vlgmr.msra.gmra.mrb[8].mxu1 %vm239_vm1, %v651_v45 }
 0x711   :  { %v1998_v18 = vpop.f32.mrb[6].mxu1 }
 0x712   :  { %v628_v19 = vpop.f32.mrb[7].mxu1 }
 0x715   :  { %v1515_v21 = vpop.f32.mrb[8].mxu1 }
 0x716   :  { %v737_v22 = vmul.f32 0.25, %v1515_v21  ;;  %v727_v23 = vpop.f32.mrb[9].mxu1  ;;  %v1063_v21 = vld [vmem:[%s2210_s4 + $0x8] sm:$0xff] }
 0x717   :  { %v736_v24 = vmul.f32 0.25, %v727_v23 }
 0x718   :  { %v739_v25 = vsel %vm1926_vm2, %v737_v22, -1e+09  ;;  %v1064_v22 = vld [vmem:[%s2210_s4 + $0x10] sm:$0xff] }
 0x719   :  { %v743_v26 = vsel %vm325_vm3, %v739_v25, -inf  ;;  %v738_v27 = vsel %vm1930_vm4, %v736_v24, -1e+09  ;;  %v1065_v24 = vld [vmem:[%s2210_s4 + $0x18] sm:$0xff] }
 0x71a   :  { %744 = vmax.xlane.f32.xlu0 %v743_v26  ;;  %v740_v28 = vsel %vm325_vm3, %v738_v27, -inf  ;;  %v1066_v26 = vld [vmem:[%s2210_s4 + $0x20] sm:$0xff] }
 0x71b   :  { %741 = vmax.xlane.f32.xlu1 %v740_v28 }
 0x72c   :  { %763 = vrot.lane.b32.xlu1 %v1978_v53, %s1776_s10 }
 0x730   :  { %853 = vrot.lane.b32.xlu1 %v195_v62, %s1778_s12 }
 0x7a7   :  { %v745_v29 = vpop.xlane.xlu0 %744 }
 0x7a8   :  { %v747_v30 = vsub.f32 %v739_v25, %v745_v29  ;;  %v742_v31 = vpop.xlane.xlu1 %741  ;;  %v1605_v25 = vpack.c.bf16 %v1065_v24, %v1064_v22  ;;  %v1068_v29 = vld [vmem:[%s2210_s4 + $0x30] sm:$0xff] }
 0x7a9   :  { %v746_v32 = vsub.f32 %v738_v27, %v742_v31  ;;  %v1067_v27 = vld [vmem:[%s2210_s4 + $0x28] sm:$0xff] }
 0x7aa   :  { %v750_v34 = vmul.f32 1.442695, %v747_v30  ;;  %v1609_v28 = vpack.c.bf16 %v1067_v27, %v1066_v26  ;;  %v1069_v30 = vld [vmem:[%s2210_s4 + $0x38] sm:$0xff]  ;;  %v1298_v26 = vld [vmem:[%s2212_s6 + $0x8] sm:$0xff] }
 0x7ab   :  { %v748_v35 = vmul.f32 1.442695, %v746_v32  ;;  %v1613_v31 = vpack.c.bf16 %v1069_v30, %v1068_v29  ;;  %v1301_v30 = vld [vmem:[%s2212_s6 + $0x20] sm:$0xff] }
 0x7ac   :  { %1696 = vpow2.f32 %v750_v34  ;;  %v764_v36 = vpop.permute.xlu1 %763 }
 0x7ad   :  { %1698 = vpow2.f32 %v748_v35  ;;  %1516 = vmatprep.subr.mxu1 %v764_v36 }
 0x7ae   :  { %1517 = vmatpush3.msra.mxu1 %v764_v36 }
 0x7b0   :  { %v854_v44 = vpop.permute.xlu1 %853 }
 0x7b6   :  { %v1697_v37 = vpop.eup %1696 }
 0x7b7   :  { %v1699_v38 = vpop.eup %1698  ;;  %v755_v40 = vsel %vm325_vm3, %v1697_v37, 0.0 }
 0x7b8   :  { %756 = vadd.xlane.f32.xlu0 %v755_v40  ;;  %v752_v43 = vsel %vm325_vm3, %v1699_v38, 0.0 }
 0x7b9   :  { %753 = vadd.xlane.f32.xlu1 %v752_v43 }
 0x7ca   :  { %855 = vrot.lane.b32.xlu1 %v651_v45, %s1778_s12 }
 0x7ce   :  { %857 = vrot.lane.b32.xlu0 %v1983_v60, %s1777_s11 }
 0x845   :  { %v757_v46 = vpop.xlane.xlu0 %756 }
 0x846   :  { %1700 = vrcp.f32 %v757_v46  ;;  %v754_v47 = vpop.xlane.xlu1 %753 }
 0x847   :  { %1702 = vrcp.f32 %v754_v47 }
 0x849   :  { %v858_v33 = vpop.permute.xlu0 %857 }
 0x84a   :  { %1521 = vmatprep.subr.msk.mxu1 %vm239_vm1, %v858_v33  ;;  %v856_v52 = vpop.permute.xlu1 %855 }
 0x850   :  { %v1701_v48 = vpop.eup %1700 }
 0x851   :  { %v1703_v49 = vpop.eup %1702  ;;  %v761_v51 = vmul.f32 %v1701_v48, %v1697_v37 }
 0x852   :  { %v759_v50 = vmul.f32 %v1703_v49, %v1699_v38 }
 0x854   :  { %1518 = vmatprep.mubr.msk.f32.mxu1 %vm325_vm3, %v759_v50  ;;  %v1182_v50 = vld [vmem:[%s2211_s5] sm:$0xff] }
 0x855   :  { %1519 = vmatmul.mubr.msk.f32.vlgmr.msra.gmra.mrb[10].mxu1 %vm325_vm3, %v761_v51  ;;  %v1184_v51 = vld [vmem:[%s2211_s5 + $0x10] sm:$0xff] }
 0x856   :  { %1522 = vmatpush3.xpose.msk.msra.mxu1 %vm239_vm1, %v858_v33  ;;  %1523 = vmatprep.mubr.msk.f32.mxu1 %vm239_vm1, %v854_v44 }
 0x859   :  { %1524 = vmatmul.mubr.msk.f32.vlgmr.msra.gmra.mrb[12].mxu1 %vm239_vm1, %v856_v52  ;;  %v1619_v52 = vpack.c.bf16 %v1184_v51, %v1182_v50  ;;  %v1312_v50 = vld [vmem:[%s2212_s6 + $0x78] sm:$0xff] }
 0x928   :  { %v1520_v54 = vpop.f32.mrb[10].mxu1 }
 0x929   :  { %v838_v55 = vpop.f32.mrb[11].mxu1 }
 0x92a   :  { %847 = vst.msk [vmem:[#allocation2 + $0x8] sm:$0xff] %vm239_vm1, %v838_v55  ;;  %v1189_v55 = vld [vmem:[%s2211_s5 + $0x38] sm:$0xff] }
 0x92c   :  { %v1525_v56 = vpop.f32.mrb[12].mxu1 }
 0x92d   :  { %v941_v57 = vmul.f32 0.25, %v1525_v56  ;;  %v931_v58 = vpop.f32.mrb[13].mxu1 }
 0x92e   :  { %v940_v59 = vmul.f32 0.25, %v931_v58  ;;  %v1188_v58 = vld [vmem:[%s2211_s5 + $0x30] sm:$0xff] }
 0x92f   :  { %v943_v60 = vsel %vm1926_vm2, %v941_v57, -1e+09  ;;  %v1186_v57 = vld [vmem:[%s2211_s5 + $0x20] sm:$0xff] }
 0x930   :  { %v947_v62 = vsel %vm325_vm3, %v943_v60, -inf  ;;  %v942_v63 = vsel %vm1930_vm4, %v940_v59, -1e+09  ;;  %v1623_v59 = vpack.c.bf16 %v1188_v58, %v1186_v57 }
 0x931   :  { %948 = vmax.xlane.f32.xlu1 %v947_v62  ;;  %v944_v41 = vsel %vm325_vm3, %v942_v63, -inf  ;;  %v1193_v62 = vld [vmem:[%s2211_s5 + $0x58] sm:$0xff] }
 0x932   :  { %945 = vmax.xlane.f32.xlu0 %v944_v41  ;;  %v1190_v41 = vld [vmem:[%s2211_s5 + $0x40] sm:$0xff] }
 0x942   :  { %966 = vrot.lane.b32.xlu1 %v1978_v53, %s1779_s7 }
 0x946   :  { %638 = vrot.lane.b32.xlu1 %v628_v19, %s1776_s10  ;;  %v1062_v19 = vld [vmem:[%s2210_s4] sm:$0xff] }
 0x947   :  { %v1601_v23 = vpack.c.bf16 %v1063_v21, %v1062_v19 }
 0x94a   :  { %849 = vrot.lane.b32.xlu1 %v1520_v54, %s1779_s7  ;;  %v1187_v54 = vld [vmem:[%s2211_s5 + $0x28] sm:$0xff] }
 0x94b   :  { %v1621_v56 = vpack.c.bf16 %v1189_v55, %v1187_v54 }
 0x9be   :  { %v949_v2 = vpop.xlane.xlu1 %948 }
 0x9bf   :  { %v951_v3 = vsub.f32 %v943_v60, %v949_v2  ;;  %v946_v61 = vpop.xlane.xlu0 %945  ;;  %v1191_v60 = vld [vmem:[%s2211_s5 + $0x48] sm:$0xff]  ;;  %v1192_v2 = vld [vmem:[%s2211_s5 + $0x50] sm:$0xff] }
 0x9c0   :  { %v950_v4 = vsub.f32 %v942_v63, %v946_v61  ;;  %v1625_v63 = vpack.c.bf16 %v1193_v62, %v1191_v60  ;;  %v1195_v61 = vld [vmem:[%s2211_s5 + $0x68] sm:$0xff] }
 0x9c1   :  { %v954_v42 = vmul.f32 1.442695, %v951_v3  ;;  %v1627_v3 = vpack.c.bf16 %v1192_v2, %v1190_v41 }
 0x9c2   :  { %v952_v5 = vmul.f32 1.442695, %v950_v4  ;;  %v967_v6 = vpop.permute.xlu1 %966  ;;  %v1197_v4 = vld [vmem:[%s2211_s5 + $0x78] sm:$0xff] }
 0x9c3   :  { %1526 = vmatprep.subr.mxu0 %v967_v6 }
 0x9c4   :  { %1704 = vpow2.f32 %v952_v5  ;;  %1527 = vmatpush3.msra.mxu0 %v967_v6  ;;  %v1629_v5 = vpack.c.bf16 %v1197_v4, %v1195_v61  ;;  %v1196_v6 = vld [vmem:[%s2211_s5 + $0x70] sm:$0xff] }
 0x9c5   :  { %1706 = vpow2.f32 %v954_v42  ;;  %1602 = vmatprep.subr.bf16.mxu0 %v1601_v23  ;;  %v1194_v42 = vld [vmem:[%s2211_s5 + $0x60] sm:$0xff] }
 0x9c6   :  { %v639_v1 = vpop.permute.xlu1 %638 }
 0x9ca   :  { %v850_v7 = vpop.permute.xlu1 %849 }
 0x9cb   :  { %852 = vst.msk [vmem:[#allocation2 + $0x8] sm:$0xff] %vm438_vm5, %v850_v7 }
 0x9ce   :  { %v1705_v53 = vpop.eup %1704 }
 0x9cf   :  { %v956_v8 = vsel %vm325_vm3, %v1705_v53, 0.0  ;;  %v1707_v9 = vpop.eup %1706 }
 0x9d0   :  { %957 = vadd.xlane.f32.xlu0 %v956_v8  ;;  %v959_v10 = vsel %vm325_vm3, %v1707_v9, 0.0 }
 0x9d4   :  { %960 = vadd.xlane.f32.xlu0 %v959_v10 }
 0x9ea   :  { %435 = vrot.lane.b32.xlu0 %v1968_v39, %s1779_s7 }
 0x9ee   :  { %644 = vrot.lane.b32.xlu0 %v1998_v18, %s1777_s11 }
 0xa5d   :  { %v958_v11 = vpop.xlane.xlu0 %957 }
 0xa5e   :  { %1708 = vrcp.f32 %v958_v11 }
 0xa61   :  { %v961_v12 = vpop.xlane.xlu0 %960 }
 0xa62   :  { %1710 = vrcp.f32 %v961_v12 }
 0xa65   :  { %v436_v13 = vpop.permute.xlu0 %435 }
 0xa66   :  { %439 = vst.msk [vmem:[#allocation2] sm:$0xff] %vm438_vm5, %v436_v13  ;;  %v1434_v13 = vld [vmem:[%s2207_s1 + $0x1] ss:$0 sm:$0xff] }
 0xa67   :  { %642 = vst.msk [vmem:[#allocation2] sm:$0xff] %vm641_vm6, %v639_v1  ;;  %v1631_v1 = vpack.c.bf16 %v1196_v6, %v1194_v42 }
 0xa68   :  { %v1709_v14 = vpop.eup %1708 }
 0xa69   :  { %v645_v15 = vpop.permute.xlu0 %644  ;;  %v963_v17 = vmul.f32 %v1709_v14, %v1705_v53 }
 0xa6a   :  { %648 = vst.msk [vmem:[#allocation2] sm:$0xff] %vm647_vm7, %v645_v15 }
 0xa6b   :  { %1528 = vmatprep.mubr.msk.f32.mxu0 %vm325_vm3, %v963_v17 }
 0xa6c   :  { %v1711_v39 = vpop.eup %1710 }
 0xa6d   :  { %v965_v45 = vmul.f32 %v1711_v39, %v1707_v9 }
 0xa6f   :  { %1529 = vmatmul.mubr.msk.f32.vlgmr.msra.gmra.mrb[4].mxu0 %vm325_vm3, %v965_v45 }
 0xa70   :  { %1604 = vmatpush3.bf16.msra.mxu0 %v1601_v23 }
 0xa71   :  { %v1060_v18 = vld [vmem:[#allocation2] sm:$0xff]  ;;  %1606 = vmatprep.subr.bf16.mxu0 %v1605_v25 }
 0xa72   :  { %1547 = vmatprep.mubr.msk.f32.mxu0 %vm46_vm0, %v1060_v18 }
 0xa74   :  { %1608 = vmatpush3.bf16.msra.mxu0 %v1605_v25  ;;  %v1297_v25 = vld [vmem:[%s2212_s6] sm:$0xff] }
 0xa75   :  { %1610 = vmatprep.subr.bf16.mxu0 %v1609_v28  ;;  %v1633_v27 = vpack.c.bf16 %v1298_v26, %v1297_v25 }
 0xa77   :  { %1634 = vmatprep.subr.bf16.mxu1 %v1633_v27 }
 0xa78   :  { %1612 = vmatpush3.bf16.msra.mxu0 %v1609_v28  ;;  %1636 = vmatpush3.bf16.msra.mxu1 %v1633_v27  ;;  %v1299_v28 = vld [vmem:[%s2212_s6 + $0x10] sm:$0xff] }
 0xa79   :  { %1614 = vmatprep.subr.bf16.mxu0 %v1613_v31 }
 0xa7c   :  { %1616 = vmatpush3.bf16.msra.mxu0 %v1613_v31  ;;  %v1302_v31 = vld [vmem:[%s2212_s6 + $0x28] sm:$0xff] }
 0xb42   :  { %v1530_v32 = vpop.f32.mrb[4].mxu0 }
 0xb43   :  { %1056 = vrot.lane.b32.xlu0 %v1530_v32, %s1777_s11  ;;  %v1041_v34 = vpop.f32.mrb[5].mxu0  ;;  %v1641_v32 = vpack.c.bf16 %v1302_v31, %v1301_v30 }
 0xb44   :  { %1051 = vrot.lane.b32.xlu1 %v1041_v34, %s1776_s10  ;;  %v1303_v34 = vld [vmem:[%s2212_s6 + $0x30] sm:$0xff] }
 0xbb5   :  { %v1057_v36 = vpop.permute.xlu0 %1056 }
 0xbb6   :  { %v1052_v35 = vpop.permute.xlu1 %1051 }
 0xbb7   :  { %1054 = vst.msk [vmem:[#allocation2 + $0x8] sm:$0xff] %vm641_vm6, %v1052_v35  ;;  %v1304_v35 = vld [vmem:[%s2212_s6 + $0x38] sm:$0xff] }
 0xbb8   :  { %1059 = vst.msk [vmem:[#allocation2 + $0x8] sm:$0xff] %vm647_vm7, %v1057_v36  ;;  %v1645_v36 = vpack.c.bf16 %v1304_v35, %v1303_v34 }
 0xbbf   :  { %v1061_v37 = vld [vmem:[#allocation2 + $0x8] sm:$0xff] }
 0xbc0   :  { %1548 = vmatmul.mubr.msk.f32.vlgmr.msra.gmra.mrb[6].mxu0 %vm46_vm0, %v1061_v37  ;;  %v1305_v37 = vld [vmem:[%s2212_s6 + $0x40] sm:$0xff] }
 0xbc1   :  { %1268 = vmatprep.mubr.f32.mxu0 %v1773_v16 }
 0xc93   :  { %v1549_v38 = vpop.f32.mrb[6].mxu0 }
 0xc94   :  { %v2075_v40 = vadd.f32 %v1549_v38, %v1951_v20  ;;  %v1142_v43 = vpop.f32.mrb[7].mxu0  ;;  %v1183_v20 = vld [vmem:[%s2211_s5 + $0x8] sm:$0xff] }
 0xc95   :  { %v2078_v44 = vadd.f32 %v1142_v43, %v1843_v0  ;;  %v1185_v0 = vld [vmem:[%s2211_s5 + $0x18] sm:$0xff]  ;;  %v1306_v38 = vld [vmem:[%s2212_s6 + $0x48] sm:$0xff] }
 0xc96   :  { %v1154_v46 = vmul.f32 %v2075_v40, %v2075_v40  ;;  %v1617_v49 = vpack.c.bf16 %v1185_v0, %v1183_v20  ;;  %v1649_v43 = vpack.c.bf16 %v1306_v38, %v1305_v37  ;;  %v1310_v20 = vld [vmem:[%s2212_s6 + $0x68] sm:$0xff] }
 0xc97   :  { %v1153_v47 = vmul.f32 %v2078_v44, %v2078_v44 }
 0xc98   :  { %v1158_v33 = vsel %vm46_vm0, %v1154_v46, 0.0  ;;  %1618 = vmatprep.subr.bf16.mxu0 %v1617_v49  ;;  %v1307_v46 = vld [vmem:[%s2212_s6 + $0x50] sm:$0xff] }
 0xc99   :  { %1159 = vadd.xlane.f32.xlu0 %v1158_v33  ;;  %v1155_v48 = vsel %vm46_vm0, %v1153_v47, 0.0  ;;  %1620 = vmatpush1.bf16.msra.mxu0 %v1619_v52  ;;  %v1308_v47 = vld [vmem:[%s2212_s6 + $0x58] sm:$0xff]  ;;  %v1311_v49 = vld [vmem:[%s2212_s6 + $0x70] sm:$0xff] }
 0xc9a   :  { %1156 = vadd.xlane.f32.xlu1 %v1155_v48  ;;  %1622 = vmatprep.subr.bf16.mxu0 %v1621_v56  ;;  %v1653_v33 = vpack.c.bf16 %v1308_v47, %v1307_v46  ;;  %v1309_v48 = vld [vmem:[%s2212_s6 + $0x60] sm:$0xff]  ;;  %v1661_v51 = vpack.c.bf16 %v1312_v50, %v1311_v49 }
 0xc9b   :  { %v1657_v0 = vpack.c.bf16 %v1310_v20, %v1309_v48 }
 0xc9d   :  { %1624 = vmatpush1.bf16.msra.mxu0 %v1623_v59 }
 0xc9e   :  { %1626 = vmatprep.subr.bf16.mxu0 %v1625_v63 }
 0xca1   :  { %1628 = vmatpush1.bf16.msra.mxu0 %v1627_v3 }
 0xca2   :  { %1630 = vmatprep.subr.bf16.mxu0 %v1629_v5 }
 0xca5   :  { %1632 = vmatpush1.bf16.msra.mxu0 %v1631_v1 }
 0xd26   :  { %v1160_v7 = vpop.xlane.xlu0 %1159 }
 0xd27   :  { %v1162_v53 = vmul.f32 0.015625, %v1160_v7  ;;  %v1157_v8 = vpop.xlane.xlu1 %1156 }
 0xd28   :  { %v1161_v9 = vmul.f32 0.015625, %v1157_v8 }
 0xd29   :  { %v1164_v10 = vadd.f32 1e-06, %v1162_v53 }
 0xd2a   :  { %v1163_v11 = vadd.f32 1e-06, %v1161_v9 }
 0xd2b   :  { %1712 = vrsqrt.f32 %v1164_v10 }
 0xd2c   :  { %1714 = vrsqrt.f32 %v1163_v11 }
 0xd35   :  { %v1713_v12 = vpop.eup %1712 }
 0xd36   :  { %v1715_v14 = vpop.eup %1714  ;;  %v1168_v15 = vmul.f32 %v1713_v12, %v2075_v40 }
 0xd37   :  { %v1167_v17 = vmul.f32 %v1715_v14, %v2078_v44 }
 0xd38   :  { %v1175_v39 = vmul.f32 %v1434_v13, %v1168_v15 }
 0xd39   :  { %v1174_v45 = vmul.f32 %v1434_v13, %v1167_v17 }
 0xd3a   :  { %v1177_v19 = vmul.f32 8193.0, %v1175_v39 }
 0xd3b   :  { %v1176_v18 = vmul.f32 8193.0, %v1174_v45 }
 0xd3c   :  { %v1179_v23 = vsub.f32 %v1177_v19, %v1175_v39 }
 0xd3d   :  { %v1178_v21 = vsub.f32 %v1176_v18, %v1174_v45 }
 0xd3e   :  { %v1181_v24 = vsub.f32 %v1177_v19, %v1179_v23 }
 0xd3f   :  { %v1180_v22 = vsub.f32 %v1176_v18, %v1178_v21 }
 0xd41   :  { %1435 = vmatmul.mubr.msk.f32.vlgmr.msra.gmra.mrb[8].mxu0 %vm46_vm0, %v1180_v22 }
 0xd42   :  { %1274 = vmatprep.mubr.f32.mxu0 %v1773_v16  ;;  %v1300_v16 = vld [vmem:[%s2212_s6 + $0x18] sm:$0xff]  ;;  %s1780_s6 = smov [#allocation6]  }
 0xd43   :  { %v1637_v29 = vpack.c.bf16 %v1300_v16, %v1299_v28  ;;  %s1397_s0 = sshll.u32 %s1780_s6, 4  ;;  %s1398_s0 = int_to_ptr.vmem [resolvable:$true] %s1397_s0 }
 0xd44   :  { %s1746_s15 = scalar_lea.vmem %s1398_s0, 256  ;;  %p1751_p9 = scmp.lt.s32.totalorder %s1398_s0, %s1398_s0 }
 0xd45   :  { %1436 = vmatmul.mubr.msk.f32.gmra.mrb[10].mxu0 %vm46_vm0, %v1181_v24  ;;  %1638 = vmatprep.subr.bf16.mxu1 %v1637_v29  ;;  %p1747_p8 = scmp.ne.s32.totalorder %s1398_s0, %s1746_s15  ;;  %p1752_p10 = scmp.lt.s32.totalorder %s1746_s15, %s1746_s15 }
 0xd46   :  { %1640 = vmatpush3.bf16.msra.mxu1 %v1637_v29 }
 0xd47   :  { %1642 = vmatprep.subr.bf16.mxu1 %v1641_v32  ;;  %p1753_p11 = por %p1752_p10, %p1751_p9 }
 0xd49   :  { %p1754_p12 = pnand %p1753_p11, %p1747_p8 }
 0xd4a   :  { %1644 = vmatpush3.bf16.msra.mxu1 %v1641_v32 }
 0xd4b   :  { %1646 = vmatprep.subr.bf16.mxu1 %v1645_v36 }
 0xd4e   :  { %1648 = vmatpush3.bf16.msra.mxu1 %v1645_v36 }
 0xd4f   :  { %1650 = vmatprep.subr.bf16.mxu1 %v1649_v43 }
 0xd52   :  { %1652 = vmatpush3.bf16.msra.mxu1 %v1649_v43 }
 0xd53   :  { %1654 = vmatprep.subr.bf16.mxu1 %v1653_v33 }
 0xd56   :  { %1656 = vmatpush3.bf16.msra.mxu1 %v1653_v33 }
 0xd57   :  { %1658 = vmatprep.subr.bf16.mxu1 %v1657_v0 }
 0xd5a   :  { %1660 = vmatpush3.bf16.msra.mxu1 %v1657_v0 }
 0xd5b   :  { %1662 = vmatprep.subr.bf16.mxu1 %v1661_v51 }
 0xd5e   :  { %1664 = vmatpush3.bf16.msra.mxu1 %v1661_v51 }
 0xe14   :  { %v1270_v52 = vpop.f32.mrb[8].mxu0 }
 0xe15   :  { %v1437_v54 = vmul.f32 -1.442695, %v1270_v52  ;;  %v1272_v55 = vpop.f32.mrb[9].mxu0 }
 0xe17   :  { %1716 = vpow2.f32 %v1437_v54 }
 0xe18   :  { %v1276_v56 = vpop.f32.mrb[10].mxu0 }
 0xe19   :  { %v1438_v57 = vmul.f32 -1.442695, %v1276_v56  ;;  %v1278_v58 = vpop.f32.mrb[11].mxu0 }
 0xe1b   :  { %1718 = vpow2.f32 %v1438_v57 }
 0xe21   :  { %v1717_v59 = vpop.eup %1716 }
 0xe22   :  { %v1287_v60 = vadd.f32 1.0, %v1717_v59 }
 0xe24   :  { %1720 = vrcp.f32 %v1287_v60 }
 0xe25   :  { %v1719_v62 = vpop.eup %1718 }
 0xe26   :  { %v1288_v63 = vadd.f32 1.0, %v1719_v62 }
 0xe28   :  { %1722 = vrcp.f32 %v1288_v63 }
 0xe2e   :  { %v1721_v41 = vpop.eup %1720 }
 0xe2f   :  { %v1293_v2 = vmul.f32 %v1721_v41, %v1270_v52 }
 0xe31   :  { %v1295_v3 = vmul.f32 %v1293_v2, %v1272_v55 }
 0xe32   :  { %v1723_v61 = vpop.eup %1722 }
 0xe33   :  { %v1294_v4 = vmul.f32 %v1723_v61, %v1276_v56  ;;  %1582 = vmatprep.mubr.f32.mxu1 %v1295_v3 }
 0xe35   :  { %v1296_v42 = vmul.f32 %v1294_v4, %v1278_v58 }
 0xe37   :  { %1583 = vmatmul.mubr.f32.vlgmr.msra.gmra.mrb[14].mxu1 %v1296_v42 }
 0xf0a   :  { %v1584_v5 = vpop.f32.mrb[14].mxu1 }
 0xf0b   :  { %v1389_v6 = vadd.f32 %v1584_v5, %v2075_v40  ;;  %v1379_v1 = vpop.f32.mrb[15].mxu1 }
 0xf0c   :  { %v1388_v7 = vadd.f32 %v1379_v1, %v2078_v44 }
 0xf0d   :  { %1391 = vst.msk [vmem:[#allocation6 + $0x8] sm:$0xff] %vm46_vm0, %v1389_v6 }
 0xf0e   :  { %1390 = vst.msk [vmem:[#allocation6] sm:$0xff] %vm46_vm0, %v1388_v7 }
 0xf0f   :  { %1757 = shalt.err (!%p1754_p12)
}
 0xf10   :  { %s1758_s17 = scalar_lea.hbm %s2214_s8, 256 }
 0xf11   :  { %p1759_p13 = scmp.ne.s32.totalorder %s2214_s8, %s1758_s17  ;;  %p1762_p0 = scmp.lt.u32.totalorder %s1758_s17, %s2214_s8 }
 0xf13   :  { %p1764_p1 = pnand %p1762_p0, %p1759_p13 }
 0xf15   :  { %1767 = shalt.err (!%p1764_p1)
}
 0xf16   :  { %s1781_s3 = smov 128   ;;  %s1782_s22 = smov 8  }
 0xf17   :  { %1403 = dma.vmem_to_hbm [thread:$0]  %s1398_s0, 256, %s2214_s8, [#allocation5], %s1781_s3, %s1781_s3, %s1782_s22  }
 0xf18   :  { %1770 = dma.done.wait [#allocation5], 256  }
 0xf19   :  { %1771 = vsyncadd [#allocation5], 4294967040 }
 0xf1a   :  { %1407 = vsyncpa [#allocation4], 1 }
 0xf1b   :  { %1408 = vsyncpa [#allocation5], 1 }

</bundles_post_ra>
